<compile_context>
chip_gen: v7x
topology: tpu7x:2x2x1
jax: 0.10.0
libtpu: 0.0.40
codegen_flags: <defaults>
</compile_context>

<pallas_src>
import functools
import math

import numpy as np

import jax
import jax.numpy as jnp
from jax.experimental import pallas as pl
from jax.experimental.pallas import tpu as pltpu


# Approximate EUP reciprocal for the softmax denominator (documented precision
# choice; set False for exact division).
_APPROX_RECIPROCAL = True


# ----------------------------- tiling helpers ------------------------------ #

def _tile_rows(m, cap=256):
    """Row (sublane) tile: multiple of 8 (or full); aim for >=2 grid steps."""
    if m <= 8:
        return m
    half = max(8, ((m + 1) // 2) // 8 * 8)
    if half < m:
        return min(cap, half)
    return min(cap, m)


def _tile_cols(n, cap=2048):
    """Lane tile: full dim if it fits the cap, else a multiple of 128."""
    if n <= cap:
        return n
    return max(128, cap // 128 * 128)


def _linear_tiles(M, K, N, budget=12 << 20):
    """Pick (tm, tn) so double-buffered tiles fit a ~12MiB budget (v5e-safe)."""
    tm, tn = _tile_rows(M), _tile_cols(N)

    def footprint(tm_, tn_):
        # f32 x tile + bf16 weight tile + f32 bias + f32 out tile, double-buffered
        return 2 * (tm_ * K * 4 + K * tn_ * 2 + tn_ * 4 + tm_ * tn_ * 4)

    while footprint(tm, tn) > budget and tm > 64:
        tm = max(64, (tm // 2) // 8 * 8)
    while footprint(tm, tn) > budget and tn > 256:
        tn = max(256, (tn // 2) // 128 * 128)
    while footprint(tm, tn) > budget and tm > 8:
        tm = max(8, (tm // 2) // 8 * 8)
    return tm, tn


def _seq_tile(s, cap):
    """Largest multiple-of-8 divisor of s that is <= cap (full s if none)."""
    if s <= cap:
        return s
    for t in range(cap - cap % 8, 7, -8):
        if s % t == 0:
            return t
    return s


# ------------------------- tiled linear (x @ Wt + b) ------------------------ #

def _linear_kernel(x_ref, wt_ref, b_ref, o_ref):
    # x: (TM, K) f32, wt: (K, TN) bf16, b: (1, TN) f32 -> o: (TM, TN)
    y = jnp.dot(x_ref[...].astype(jnp.bfloat16), wt_ref[...],
                preferred_element_type=jnp.float32)
    o_ref[...] = (y + b_ref[...]).astype(o_ref.dtype)


def pallas_linear(x, wt, b2):
    """x: (M, K) f32; wt: (K, N) bf16 pre-transposed weight; b2: (1, N) f32."""
    M, K = x.shape
    N = wt.shape[1]
    tm, tn = _linear_tiles(M, K, N)
    n_col = pl.cdiv(N, tn)
    n_row = pl.cdiv(M, tm)
    # Weight-column axis OUTER, row axis inner: each weight tile is fetched
    # once and stays resident while the x row tiles stream past it.
    grid = (n_col, n_row)
    cost = pl.CostEstimate(
        flops=2 * M * N * K,
        transcendentals=0,
        bytes_accessed=4 * M * K * n_col + 2 * K * N + 4 * (M * N + N),
    )
    return pl.pallas_call(
        _linear_kernel,
        out_shape=jax.ShapeDtypeStruct((M, N), x.dtype),
        grid=grid,
        in_specs=[
            pl.BlockSpec((tm, K), lambda j, i: (i, 0)),
            pl.BlockSpec((K, tn), lambda j, i: (0, j)),
            pl.BlockSpec((1, tn), lambda j, i: (0, j)),
        ],
        out_specs=pl.BlockSpec((tm, tn), lambda j, i: (i, j)),
        compiler_params=pltpu.CompilerParams(
            dimension_semantics=("parallel", "parallel")),
        cost_estimate=cost,
    )(x, wt, b2)


# ------------- attention core: fused RoPE + flash softmax + PV -------------- #

def _rotate_heads(x, cos, sin, num_heads, head_dim):
    """x: (S, W) f32 in per-head [re|im] column order; cos/sin: (S, Dh/2).
    Returns the rotated (S, W) array (same column order)."""
    Dh = head_dim
    Dh2 = Dh // 2
    pieces = []
    for h in range(num_heads):
        re = x[:, h * Dh:h * Dh + Dh2]
        im = x[:, h * Dh + Dh2:(h + 1) * Dh]
        pieces.append(re * cos - im * sin)
        pieces.append(re * sin + im * cos)
    return jnp.concatenate(pieces, axis=-1)


def _attn_kernel(q_ref, kv_ref, cq_ref, sq_ref, ck_ref, sk_ref, o_ref,
                 qr_sc, m_sc, l_sc, acc_sc, *, num_heads, head_dim):
    W = num_heads * head_dim
    Dh = head_dim
    ki = pl.program_id(2)
    nk = pl.num_programs(2)

    @pl.when(ki == 0)
    def _init():
        # Rotate q once per (batch, q-tile); 1/sqrt(Dh) is folded into cq/sq.
        q = q_ref[0].astype(jnp.float32)                     # (tq, W)
        qr = _rotate_heads(q, cq_ref[...], sq_ref[...], num_heads, Dh)
        qr_sc[...] = qr.astype(qr_sc.dtype)                  # single lane-dense store
        m_sc[...] = jnp.full_like(m_sc, -jnp.inf)
        l_sc[...] = jnp.zeros_like(l_sc)
        acc_sc[...] = jnp.zeros_like(acc_sc)

    kv = kv_ref[0].astype(jnp.float32)                       # (tk, 2W)
    k = kv[:, :W]
    v_b = kv[:, W:].astype(jnp.bfloat16)

    kr = _rotate_heads(k, ck_ref[...], sk_ref[...], num_heads, Dh)
    kr = kr.astype(jnp.bfloat16)                             # (tk, W)
    qr = qr_sc[...]                                          # (tq, W) bf16

    m_prev = m_sc[...]                                       # (tq, H)
    l_prev = l_sc[...]
    acc_prev = acc_sc[...]                                   # (tq, W)

    m_cols, l_cols, acc_cols = [], [], []
    # Per-head (tq, tk) score temporaries die inside each loop iteration; the
    # kv grid axis bounds tk, keeping live ranges / VMEM footprint small.
    for h in range(num_heads):
        qr_h = qr[:, h * Dh:(h + 1) * Dh]                    # (tq, Dh) bf16
        kr_h = kr[:, h * Dh:(h + 1) * Dh]                    # (tk, Dh) bf16
        # ONE MXU dot per head with full-Dh contraction (f32 accumulation).
        s = jax.lax.dot_general(qr_h, kr_h, (((1,), (1,)), ((), ())),
                                preferred_element_type=jnp.float32)  # (tq, tk)
        m_p = m_prev[:, h:h + 1]
        m_n = jnp.maximum(m_p, jnp.max(s, axis=-1, keepdims=True))
        alpha = jnp.exp(m_p - m_n)
        p = jnp.exp(s - m_n)
        l_n = alpha * l_prev[:, h:h + 1] + jnp.sum(p, axis=-1, keepdims=True)
        pv = jnp.dot(p.astype(jnp.bfloat16), v_b[:, h * Dh:(h + 1) * Dh],
                     preferred_element_type=jnp.float32)     # (tq, Dh)
        acc_cols.append(alpha * acc_prev[:, h * Dh:(h + 1) * Dh] + pv)
        m_cols.append(m_n)
        l_cols.append(l_n)

    m_sc[...] = jnp.concatenate(m_cols, axis=-1)
    l_sc[...] = jnp.concatenate(l_cols, axis=-1)
    acc_sc[...] = jnp.concatenate(acc_cols, axis=-1)

    @pl.when(ki == nk - 1)
    def _finalize():
        if _APPROX_RECIPROCAL:
            inv_l = pl.reciprocal(l_sc[...], approx=True)    # (tq, H)
        else:
            inv_l = 1.0 / l_sc[...]
        acc = acc_sc[...]
        out_cols = [acc[:, h * Dh:(h + 1) * Dh] * inv_l[:, h:h + 1]
                    for h in range(num_heads)]
        # single lane-dense (tq, W) store
        o_ref[0] = jnp.concatenate(out_cols, axis=-1).astype(o_ref.dtype)


def pallas_attention(q, kv, cos_q, sin_q, cos_k, sin_k, num_heads, head_dim):
    """q: (B, Sq, W); kv: (B, Sk, 2W) -> (B, Sq, W) context (heads packed)."""
    B, Sq, W = q.shape
    _, Sk, _ = kv.shape
    Dh2 = head_dim // 2
    tq = _seq_tile(Sq, 256)
    tk = _seq_tile(Sk, 512)
    nq = Sq // tq
    nk = Sk // tk
    kernel = functools.partial(_attn_kernel, num_heads=num_heads,
                               head_dim=head_dim)
    cost = pl.CostEstimate(
        flops=4 * B * Sq * Sk * W,
        transcendentals=B * num_heads * Sq * Sk,
        bytes_accessed=4 * (2 * B * Sq * W) + 4 * B * nq * Sk * 2 * W
                       + 4 * (Sq + Sk) * head_dim,
    )
    return pl.pallas_call(
        kernel,
        out_shape=jax.ShapeDtypeStruct((B, Sq, W), q.dtype),
        grid=(B, nq, nk),
        in_specs=[
            pl.BlockSpec((1, tq, W), lambda b, qi, ki: (b, qi, 0)),
            pl.BlockSpec((1, tk, 2 * W), lambda b, qi, ki: (b, ki, 0)),
            pl.BlockSpec((tq, Dh2), lambda b, qi, ki: (qi, 0)),
            pl.BlockSpec((tq, Dh2), lambda b, qi, ki: (qi, 0)),
            pl.BlockSpec((tk, Dh2), lambda b, qi, ki: (ki, 0)),
            pl.BlockSpec((tk, Dh2), lambda b, qi, ki: (ki, 0)),
        ],
        out_specs=pl.BlockSpec((1, tq, W), lambda b, qi, ki: (b, qi, 0)),
        scratch_shapes=[
            pltpu.VMEM((tq, W), jnp.bfloat16),        # rotated, pre-scaled q
            pltpu.VMEM((tq, num_heads), jnp.float32), # running max per head
            pltpu.VMEM((tq, num_heads), jnp.float32), # running denom per head
            pltpu.VMEM((tq, W), jnp.float32),         # context accumulator
        ],
        compiler_params=pltpu.CompilerParams(
            dimension_semantics=("parallel", "parallel", "arbitrary")),
        cost_estimate=cost,
    )(q, kv, cos_q, sin_q, cos_k, sin_k)


# ----------------- output dense + residual + LayerNorm (rows) --------------- #

def _out_kernel(ctx_ref, wt_ref, b_ref, res_ref, g_ref, beta_ref, o_ref, *, eps):
    y = jnp.dot(ctx_ref[...].astype(jnp.bfloat16), wt_ref[...],
                preferred_element_type=jnp.float32)
    z = y + b_ref[...] + res_ref[...].astype(jnp.float32)
    mu = jnp.mean(z, axis=-1, keepdims=True)
    var = jnp.mean((z - mu) * (z - mu), axis=-1, keepdims=True)
    zn = (z - mu) * jax.lax.rsqrt(var + eps)
    o_ref[...] = (zn * g_ref[...] + beta_ref[...]).astype(o_ref.dtype)


def pallas_self_output(ctx, wo_t, bo2, residual, gamma2, beta2, eps):
    """ctx/residual: (M, H) f32; wo_t: (H, H) bf16; bo2/gamma2/beta2: (1, H) f32."""
    M, H = ctx.shape
    tm = _tile_rows(M)
    grid = (pl.cdiv(M, tm),)
    kernel = functools.partial(_out_kernel, eps=eps)
    cost = pl.CostEstimate(
        flops=2 * M * H * H + 10 * M * H,
        transcendentals=M,
        bytes_accessed=4 * 3 * M * H + 2 * H * H + 4 * 3 * H,
    )
    return pl.pallas_call(
        kernel,
        out_shape=jax.ShapeDtypeStruct((M, H), ctx.dtype),
        grid=grid,
        in_specs=[
            pl.BlockSpec((tm, H), lambda i: (i, 0)),
            pl.BlockSpec((H, H), lambda i: (0, 0)),
            pl.BlockSpec((1, H), lambda i: (0, 0)),
            pl.BlockSpec((tm, H), lambda i: (i, 0)),
            pl.BlockSpec((1, H), lambda i: (0, 0)),
            pl.BlockSpec((1, H), lambda i: (0, 0)),
        ],
        out_specs=pl.BlockSpec((tm, H), lambda i: (i, 0)),
        compiler_params=pltpu.CompilerParams(
            dimension_semantics=("parallel",)),
        cost_estimate=cost,
    )(ctx, wo_t, bo2, residual, gamma2, beta2)


# ------------------- one-time weight re-layout + RoPE tables ---------------- #

def _rope_tables(dim, end, constant=10000.0):
    # matches precompute_freqs_cis: angle[t, j] = t / constant**(2j/dim)
    freqs = 1.0 / (constant ** (jnp.arange(0, dim, 2)[: dim // 2]
                                .astype(jnp.float32) / dim))
    t = jnp.arange(end, dtype=jnp.float32)
    ang = jnp.outer(t, freqs)                     # (end, dim//2)
    return jnp.cos(ang), jnp.sin(ang)


def prepare(params, num_heads, seq_q, seq_k):
    """Done ONCE outside the traced forward:
      * permute Q/K output features so EACH HEAD's columns are a contiguous
        [re_0..re_{Dh/2-1} | im_0..im_{Dh/2-1}] block (scores are invariant to a
        consistent q/k column permutation) -> single Dh-deep QK dot per head,
      * fuse K and V projection weights/biases into one (Ew, 2W) weight,
      * pre-transpose all weights to (K, N) and store them in bf16,
      * precompute untiled (S, Dh/2) RoPE cos/sin tables; fold 1/sqrt(Dh)
        into the q-side tables.
    """
    W = params["wq"].shape[0]
    Dh = W // num_heads
    idx = np.arange(W).reshape(num_heads, Dh)
    perm = np.concatenate(
        [np.concatenate([idx[h, 0::2], idx[h, 1::2]]) for h in range(num_heads)])
    perm = jnp.asarray(perm)

    wq_t = jnp.transpose(params["wq"][perm, :]).astype(jnp.bfloat16)   # (Hdim, W)
    bq = params["bq"][perm].reshape(1, W).astype(jnp.float32)
    wkv = jnp.concatenate([params["wk"][perm, :], params["wv"]], axis=0)
    wkv_t = jnp.transpose(wkv).astype(jnp.bfloat16)                    # (Ew, 2W)
    bkv = jnp.concatenate([params["bk"][perm], params["bv"]]
                          ).reshape(1, 2 * W).astype(jnp.float32)
    wo_t = jnp.transpose(params["wo"]).astype(jnp.bfloat16)            # (W, W)
    bo = params["bo"].reshape(1, W).astype(jnp.float32)
    gamma = params["gamma"].reshape(1, W).astype(jnp.float32)
    beta = params["beta"].reshape(1, W).astype(jnp.float32)

    scale = 1.0 / math.sqrt(Dh)
    cq, sq = _rope_tables(Dh, seq_q)          # (Sq, Dh/2)
    ck, sk = _rope_tables(Dh, seq_k)          # (Sk, Dh/2)

    return dict(wq_t=wq_t, bq=bq, wkv_t=wkv_t, bkv=bkv, wo_t=wo_t, bo=bo,
                gamma=gamma, beta=beta,
                cos_q=cq * scale, sin_q=sq * scale, cos_k=ck, sin_k=sk)


# --------------------------- full forward wrapper --------------------------- #

def bert_attention_forward(prep, hidden_states, encoder_hidden_states,
                           num_heads, eps=1e-12):
    B, Sq, W = hidden_states.shape
    _, Sk, Ew = encoder_hidden_states.shape
    Dh = W // num_heads

    x_q = hidden_states.reshape(B * Sq, W)
    x_kv = encoder_hidden_states.reshape(B * Sk, Ew)

    q = pallas_linear(x_q, prep["wq_t"], prep["bq"])         # (B*Sq, W)
    kv = pallas_linear(x_kv, prep["wkv_t"], prep["bkv"])     # (B*Sk, 2W) fused K|V

    ctx = pallas_attention(q.reshape(B, Sq, W), kv.reshape(B, Sk, 2 * W),
                           prep["cos_q"], prep["sin_q"],
                           prep["cos_k"], prep["sin_k"], num_heads, Dh)

    out = pallas_self_output(ctx.reshape(B * Sq, W), prep["wo_t"], prep["bo"],
                             x_q, prep["gamma"], prep["beta"], eps)
    # TODO(synk): past_key_value / attention_probs outputs are dropped.
    return out.reshape(B, Sq, W)


# ------------------------------ JAX reference ------------------------------- #

def _ref_apply_rope(x, cos, sin):
    # x: (B, S, H, Dh); interleaved-pair complex rotation (view_as_complex).
    B, S, H, D = x.shape
    xr = x.astype(jnp.float32).reshape(B, S, H, D // 2, 2)
    re, im = xr[..., 0], xr[..., 1]
    c = cos[None, :, None, :]
    s = sin[None, :, None, :]
    out_re = re * c - im * s
    out_im = re * s + im * c
    return jnp.stack([out_re, out_im], axis=-1).reshape(B, S, H, D).astype(x.dtype)


def bert_attention_reference(params, hidden_states, encoder_hidden_states,
                             num_heads, eps=1e-12):
    B, Sq, Hdim = hidden_states.shape
    _, Sk, Ew = encoder_hidden_states.shape
    Dh = Hdim // num_heads
    hp = jax.lax.Precision.HIGHEST

    def lin(x, w, b):
        return jnp.einsum("bsk,nk->bsn", x, w, precision=hp) + b

    q = lin(hidden_states, params["wq"], params["bq"]).reshape(B, Sq, num_heads, Dh)
    k = lin(encoder_hidden_states, params["wk"], params["bk"]).reshape(B, Sk, num_heads, Dh)
    v = lin(encoder_hidden_states, params["wv"], params["bv"]).reshape(B, Sk, num_heads, Dh)

    cos_q, sin_q = _rope_tables(Dh, Sq)
    cos_k, sin_k = _rope_tables(Dh, Sk)
    q = _ref_apply_rope(q, cos_q, sin_q).transpose(0, 2, 1, 3)
    k = _ref_apply_rope(k, cos_k, sin_k).transpose(0, 2, 1, 3)
    v = v.transpose(0, 2, 1, 3)

    scores = jnp.einsum("bhqd,bhkd->bhqk", q, k, precision=hp) / math.sqrt(Dh)
    probs = jax.nn.softmax(scores, axis=-1)
    ctx = jnp.einsum("bhqk,bhkd->bhqd", probs, v, precision=hp)
    ctx = ctx.transpose(0, 2, 1, 3).reshape(B, Sq, Hdim)

    y = jnp.einsum("bsk,nk->bsn", ctx, params["wo"], precision=hp) + params["bo"]
    z = y + hidden_states
    mu = jnp.mean(z, axis=-1, keepdims=True)
    var = jnp.mean((z - mu) ** 2, axis=-1, keepdims=True)
    return (z - mu) / jnp.sqrt(var + eps) * params["gamma"] + params["beta"]


# ---------------------------------- main ------------------------------------ #

if __name__ == "__main__":
    B, Sq, Sk = 2, 8, 16
    HIDDEN, HEADS, ENC_W = 32, 4, 48
    EPS = 1e-12

    key = jax.random.PRNGKey(0)
    ks = jax.random.split(key, 12)

    def w(k, shape):
        return jax.random.normal(k, shape, jnp.float32) * 0.02

    params = {
        "wq": w(ks[0], (HIDDEN, HIDDEN)), "bq": w(ks[1], (HIDDEN,)),
        "wk": w(ks[2], (HIDDEN, ENC_W)),  "bk": w(ks[3], (HIDDEN,)),
        "wv": w(ks[4], (HIDDEN, ENC_W)),  "bv": w(ks[5], (HIDDEN,)),
        "wo": w(ks[6], (HIDDEN, HIDDEN)), "bo": w(ks[7], (HIDDEN,)),
        "gamma": jnp.ones((HIDDEN,), jnp.float32),
        "beta": jnp.zeros((HIDDEN,), jnp.float32),
    }

    hidden_states = jax.random.normal(ks[8], (B, Sq, HIDDEN), jnp.float32)
    encoder_hidden_states = jax.random.normal(ks[9], (B, Sk, ENC_W), jnp.float32)

    # One-time weight re-layout / RoPE-table precompute (outside traced fwd).
    prep = prepare(params, HEADS, Sq, Sk)

    fwd = jax.jit(functools.partial(bert_attention_forward,
                                    num_heads=HEADS, eps=EPS))
    out = fwd(prep, hidden_states, encoder_hidden_states)
    out = jax.block_until_ready(out)

    ref = bert_attention_reference(params, hidden_states, encoder_hidden_states,
                                   HEADS, EPS)
    assert out.shape == (B, Sq, HIDDEN)
    assert jnp.allclose(out, ref, atol=2e-3, rtol=2e-3), \
        f"max abs err {jnp.max(jnp.abs(out - ref))}"

    print("KERNEL_OK")
</pallas_src>

<mosaic_0001>
module attributes {stable_mosaic.version = 11 : i64} {
  func.func @_linear_kernel(%arg0: i32, %arg1: i32, %arg2: memref<8x32xf32, #tpu.memory_space<vmem>>, %arg3: memref<32x32xbf16, #tpu.memory_space<vmem>>, %arg4: memref<1x32xf32, #tpu.memory_space<vmem>>, %arg5: memref<8x32xf32, #tpu.memory_space<vmem>>) attributes {dimension_semantics = [#tpu.dimension_semantics<parallel>, #tpu.dimension_semantics<parallel>], iteration_bounds = array<i64: 1, 2>, scalar_prefetch = 0 : i64, scratch_operands = 0 : i64, tpu.core_type = #tpu.core_type<tc>, window_params = [{transform_indices = @transform_0, window_bounds = array<i64: 8, 32>}, {transform_indices = @transform_1, window_bounds = array<i64: 32, 32>}, {transform_indices = @transform_2, window_bounds = array<i64: 1, 32>}, {transform_indices = @transform_3, window_bounds = array<i64: 8, 32>}]} {
    %c0 = arith.constant 0 : index
    %c0_0 = arith.constant 0 : index
    %0 = vector.load %arg2[%c0, %c0_0] : memref<8x32xf32, #tpu.memory_space<vmem>>, vector<8x32xf32>
    %1 = arith.truncf %0 : vector<8x32xf32> to vector<8x32xbf16>
    %c0_1 = arith.constant 0 : index
    %c0_2 = arith.constant 0 : index
    %2 = vector.load %arg3[%c0_1, %c0_2] : memref<32x32xbf16, #tpu.memory_space<vmem>>, vector<32x32xbf16>
    %cst = arith.constant dense<0.000000e+00> : vector<8x32xf32>
    %3 = tpu.matmul %1, %2, %cst {dimension_numbers = #tpu.dot_dimension_numbers<[1], [0], [0], [1], [0, 0, 1, 1], [], []>} : vector<8x32xbf16>, vector<32x32xbf16>, vector<8x32xf32> -> vector<8x32xf32>
    %c0_3 = arith.constant 0 : index
    %c0_4 = arith.constant 0 : index
    %4 = vector.load %arg4[%c0_3, %c0_4] : memref<1x32xf32, #tpu.memory_space<vmem>>, vector<1x32xf32>
    %5 = vector.broadcast %4 : vector<1x32xf32> to vector<8x32xf32>
    %6 = arith.addf %3, %5 : vector<8x32xf32>
    %c0_5 = arith.constant 0 : index
    %c0_6 = arith.constant 0 : index
    %7 = vector.load %arg5[%c0_5, %c0_6] : memref<8x32xf32, #tpu.memory_space<vmem>>, vector<8x32xf32>
    tpu.vector_store %arg5[%c0_5, %c0_6], %6 {strides = array<i32>} : memref<8x32xf32, #tpu.memory_space<vmem>>, vector<8x32xf32>,
    return
  }
  func.func @transform_0(%arg0: i32, %arg1: i32) -> (i32, i32) {
    %c0_i32 = arith.constant 0 : i32
    %c0_i32_0 = arith.constant 0 : i32
    return %arg1, %c0_i32 : i32, i32
  }
  func.func @transform_1(%arg0: i32, %arg1: i32) -> (i32, i32) {
    %c0_i32 = arith.constant 0 : i32
    %c0_i32_0 = arith.constant 0 : i32
    return %c0_i32, %arg0 : i32, i32
  }
  func.func @transform_2(%arg0: i32, %arg1: i32) -> (i32, i32) {
    %c0_i32 = arith.constant 0 : i32
    %c0_i32_0 = arith.constant 0 : i32
    return %c0_i32, %arg0 : i32, i32
  }
  func.func @transform_3(%arg0: i32, %arg1: i32) -> (i32, i32) {
    %c0_i32 = arith.constant 0 : i32
    return %arg1, %arg0 : i32, i32
  }
}

module attributes {stable_mosaic.version = 11 : i64} {
  func.func @_linear_kernel(%arg0: i32, %arg1: i32, %arg2: memref<16x48xf32, #tpu.memory_space<vmem>>, %arg3: memref<48x64xbf16, #tpu.memory_space<vmem>>, %arg4: memref<1x64xf32, #tpu.memory_space<vmem>>, %arg5: memref<16x64xf32, #tpu.memory_space<vmem>>) attributes {dimension_semantics = [#tpu.dimension_semantics<parallel>, #tpu.dimension_semantics<parallel>], iteration_bounds = array<i64: 1, 2>, scalar_prefetch = 0 : i64, scratch_operands = 0 : i64, tpu.core_type = #tpu.core_type<tc>, window_params = [{transform_indices = @transform_0, window_bounds = array<i64: 16, 48>}, {transform_indices = @transform_1, window_bounds = array<i64: 48, 64>}, {transform_indices = @transform_2, window_bounds = array<i64: 1, 64>}, {transform_indices = @transform_3, window_bounds = array<i64: 16, 64>}]} {
    %c0 = arith.constant 0 : index
    %c0_0 = arith.constant 0 : index
    %0 = vector.load %arg2[%c0, %c0_0] : memref<16x48xf32, #tpu.memory_space<vmem>>, vector<16x48xf32>
    %1 = arith.truncf %0 : vector<16x48xf32> to vector<16x48xbf16>
    %c0_1 = arith.constant 0 : index
    %c0_2 = arith.constant 0 : index
    %2 = vector.load %arg3[%c0_1, %c0_2] : memref<48x64xbf16, #tpu.memory_space<vmem>>, vector<48x64xbf16>
    %cst = arith.constant dense<0.000000e+00> : vector<16x64xf32>
    %3 = tpu.matmul %1, %2, %cst {dimension_numbers = #tpu.dot_dimension_numbers<[1], [0], [0], [1], [0, 0, 1, 1], [], []>} : vector<16x48xbf16>, vector<48x64xbf16>, vector<16x64xf32> -> vector<16x64xf32>
    %c0_3 = arith.constant 0 : index
    %c0_4 = arith.constant 0 : index
    %4 = vector.load %arg4[%c0_3, %c0_4] : memref<1x64xf32, #tpu.memory_space<vmem>>, vector<1x64xf32>
    %5 = vector.broadcast %4 : vector<1x64xf32> to vector<16x64xf32>
    %6 = arith.addf %3, %5 : vector<16x64xf32>
    %c0_5 = arith.constant 0 : index
    %c0_6 = arith.constant 0 : index
    %7 = vector.load %arg5[%c0_5, %c0_6] : memref<16x64xf32, #tpu.memory_space<vmem>>, vector<16x64xf32>
    tpu.vector_store %arg5[%c0_5, %c0_6], %6 {strides = array<i32>} : memref<16x64xf32, #tpu.memory_space<vmem>>, vector<16x64xf32>,
    return
  }
  func.func @transform_0(%arg0: i32, %arg1: i32) -> (i32, i32) {
    %c0_i32 = arith.constant 0 : i32
    %c0_i32_0 = arith.constant 0 : i32
    return %arg1, %c0_i32 : i32, i32
  }
  func.func @transform_1(%arg0: i32, %arg1: i32) -> (i32, i32) {
    %c0_i32 = arith.constant 0 : i32
    %c0_i32_0 = arith.constant 0 : i32
    return %c0_i32, %arg0 : i32, i32
  }
  func.func @transform_2(%arg0: i32, %arg1: i32) -> (i32, i32) {
    %c0_i32 = arith.constant 0 : i32
    %c0_i32_0 = arith.constant 0 : i32
    return %c0_i32, %arg0 : i32, i32
  }
  func.func @transform_3(%arg0: i32, %arg1: i32) -> (i32, i32) {
    %c0_i32 = arith.constant 0 : i32
    return %arg1, %arg0 : i32, i32
  }
}

module attributes {stable_mosaic.version = 11 : i64} {
  func.func @_out_kernel(%arg0: i32, %arg1: memref<8x32xf32, #tpu.memory_space<vmem>>, %arg2: memref<32x32xbf16, #tpu.memory_space<vmem>>, %arg3: memref<1x32xf32, #tpu.memory_space<vmem>>, %arg4: memref<8x32xf32, #tpu.memory_space<vmem>>, %arg5: memref<1x32xf32, #tpu.memory_space<vmem>>, %arg6: memref<1x32xf32, #tpu.memory_space<vmem>>, %arg7: memref<8x32xf32, #tpu.memory_space<vmem>>) attributes {dimension_semantics = [#tpu.dimension_semantics<parallel>], iteration_bounds = array<i64: 2>, scalar_prefetch = 0 : i64, scratch_operands = 0 : i64, tpu.core_type = #tpu.core_type<tc>, window_params = [{transform_indices = @transform_0, window_bounds = array<i64: 8, 32>}, {pipeline_mode = #tpu.pipeline_mode<synchronous>, transform_indices = @transform_1, window_bounds = array<i64: 32, 32>}, {pipeline_mode = #tpu.pipeline_mode<synchronous>, transform_indices = @transform_2, window_bounds = array<i64: 1, 32>}, {transform_indices = @transform_3, window_bounds = array<i64: 8, 32>}, {pipeline_mode = #tpu.pipeline_mode<synchronous>, transform_indices = @transform_4, window_bounds = array<i64: 1, 32>}, {pipeline_mode = #tpu.pipeline_mode<synchronous>, transform_indices = @transform_5, window_bounds = array<i64: 1, 32>}, {transform_indices = @transform_6, window_bounds = array<i64: 8, 32>}]} {
    %c0 = arith.constant 0 : index
    %c0_0 = arith.constant 0 : index
    %0 = vector.load %arg1[%c0, %c0_0] : memref<8x32xf32, #tpu.memory_space<vmem>>, vector<8x32xf32>
    %1 = arith.truncf %0 : vector<8x32xf32> to vector<8x32xbf16>
    %c0_1 = arith.constant 0 : index
    %c0_2 = arith.constant 0 : index
    %2 = vector.load %arg2[%c0_1, %c0_2] : memref<32x32xbf16, #tpu.memory_space<vmem>>, vector<32x32xbf16>
    %cst = arith.constant dense<0.000000e+00> : vector<8x32xf32>
    %3 = tpu.matmul %1, %2, %cst {dimension_numbers = #tpu.dot_dimension_numbers<[1], [0], [0], [1], [0, 0, 1, 1], [], []>} : vector<8x32xbf16>, vector<32x32xbf16>, vector<8x32xf32> -> vector<8x32xf32>
    %c0_3 = arith.constant 0 : index
    %c0_4 = arith.constant 0 : index
    %4 = vector.load %arg3[%c0_3, %c0_4] : memref<1x32xf32, #tpu.memory_space<vmem>>, vector<1x32xf32>
    %5 = vector.broadcast %4 : vector<1x32xf32> to vector<8x32xf32>
    %6 = arith.addf %3, %5 : vector<8x32xf32>
    %c0_5 = arith.constant 0 : index
    %c0_6 = arith.constant 0 : index
    %7 = vector.load %arg4[%c0_5, %c0_6] : memref<8x32xf32, #tpu.memory_space<vmem>>, vector<8x32xf32>
    %8 = arith.addf %6, %7 : vector<8x32xf32>
    %cst_7 = arith.constant dense<0.000000e+00> : vector<8xf32>
    %9 = vector.multi_reduction <add>, %8, %cst_7 [1] : vector<8x32xf32> to vector<8xf32>
    %10 = vector.shape_cast %9 : vector<8xf32> to vector<8x1xf32>
    %cst_8 = arith.constant 3.200000e+01 : f32
    %11 = vector.broadcast %cst_8 : f32 to vector<8x1xf32>
    %12 = arith.divf %10, %11 : vector<8x1xf32>
    %13 = vector.broadcast %12 : vector<8x1xf32> to vector<8x32xf32>
    %14 = arith.subf %8, %13 : vector<8x32xf32>
    %15 = vector.broadcast %12 : vector<8x1xf32> to vector<8x32xf32>
    %16 = arith.subf %8, %15 : vector<8x32xf32>
    %17 = arith.mulf %14, %16 : vector<8x32xf32>
    %cst_9 = arith.constant dense<0.000000e+00> : vector<8xf32>
    %18 = vector.multi_reduction <add>, %17, %cst_9 [1] : vector<8x32xf32> to vector<8xf32>
    %19 = vector.shape_cast %18 : vector<8xf32> to vector<8x1xf32>
    %cst_10 = arith.constant 3.200000e+01 : f32
    %20 = vector.broadcast %cst_10 : f32 to vector<8x1xf32>
    %21 = arith.divf %19, %20 : vector<8x1xf32>
    %22 = vector.broadcast %12 : vector<8x1xf32> to vector<8x32xf32>
    %23 = arith.subf %8, %22 : vector<8x32xf32>
    %cst_11 = arith.constant 9.99999996E-13 : f32
    %24 = vector.broadcast %cst_11 : f32 to vector<8x1xf32>
    %25 = arith.addf %21, %24 : vector<8x1xf32>
    %26 = math.rsqrt %25 : vector<8x1xf32>
    %27 = vector.broadcast %26 : vector<8x1xf32> to vector<8x32xf32>
    %28 = arith.mulf %23, %27 : vector<8x32xf32>
    %c0_12 = arith.constant 0 : index
    %c0_13 = arith.constant 0 : index
    %29 = vector.load %arg5[%c0_12, %c0_13] : memref<1x32xf32, #tpu.memory_space<vmem>>, vector<1x32xf32>
    %30 = vector.broadcast %29 : vector<1x32xf32> to vector<8x32xf32>
    %31 = arith.mulf %28, %30 : vector<8x32xf32>
    %c0_14 = arith.constant 0 : index
    %c0_15 = arith.constant 0 : index
    %32 = vector.load %arg6[%c0_14, %c0_15] : memref<1x32xf32, #tpu.memory_space<vmem>>, vector<1x32xf32>
    %33 = vector.broadcast %32 : vector<1x32xf32> to vector<8x32xf32>
    %34 = arith.addf %31, %33 : vector<8x32xf32>
    %c0_16 = arith.constant 0 : index
    %c0_17 = arith.constant 0 : index
    %35 = vector.load %arg7[%c0_16, %c0_17] : memref<8x32xf32, #tpu.memory_space<vmem>>, vector<8x32xf32>
    tpu.vector_store %arg7[%c0_16, %c0_17], %34 {strides = array<i32>} : memref<8x32xf32, #tpu.memory_space<vmem>>, vector<8x32xf32>,
    return
  }
  func.func @transform_0(%arg0: i32) -> (i32, i32) {
    %c0_i32 = arith.constant 0 : i32
    %c0_i32_0 = arith.constant 0 : i32
    return %arg0, %c0_i32 : i32, i32
  }
  func.func @transform_1(%arg0: i32) -> (i32, i32) {
    %c0_i32 = arith.constant 0 : i32
    %c0_i32_0 = arith.constant 0 : i32
    %c0_i32_1 = arith.constant 0 : i32
    return %c0_i32, %c0_i32_0 : i32, i32
  }
  func.func @transform_2(%arg0: i32) -> (i32, i32) {
    %c0_i32 = arith.constant 0 : i32
    %c0_i32_0 = arith.constant 0 : i32
    %c0_i32_1 = arith.constant 0 : i32
    return %c0_i32, %c0_i32_0 : i32, i32
  }
  func.func @transform_3(%arg0: i32) -> (i32, i32) {
    %c0_i32 = arith.constant 0 : i32
    %c0_i32_0 = arith.constant 0 : i32
    return %arg0, %c0_i32 : i32, i32
  }
  func.func @transform_4(%arg0: i32) -> (i32, i32) {
    %c0_i32 = arith.constant 0 : i32
    %c0_i32_0 = arith.constant 0 : i32
    %c0_i32_1 = arith.constant 0 : i32
    return %c0_i32, %c0_i32_0 : i32, i32
  }
  func.func @transform_5(%arg0: i32) -> (i32, i32) {
    %c0_i32 = arith.constant 0 : i32
    %c0_i32_0 = arith.constant 0 : i32
    %c0_i32_1 = arith.constant 0 : i32
    return %c0_i32, %c0_i32_0 : i32, i32
  }
  func.func @transform_6(%arg0: i32) -> (i32, i32) {
    %c0_i32 = arith.constant 0 : i32
    %c0_i32_0 = arith.constant 0 : i32
    return %arg0, %c0_i32 : i32, i32
  }
}

module attributes {stable_mosaic.version = 11 : i64} {
  func.func @_attn_kernel(%arg0: i32, %arg1: i32, %arg2: i32, %arg3: memref<1x8x32xf32, #tpu.memory_space<vmem>>, %arg4: memref<1x16x64xf32, #tpu.memory_space<vmem>>, %arg5: memref<8x4xf32, #tpu.memory_space<vmem>>, %arg6: memref<8x4xf32, #tpu.memory_space<vmem>>, %arg7: memref<16x4xf32, #tpu.memory_space<vmem>>, %arg8: memref<16x4xf32, #tpu.memory_space<vmem>>, %arg9: memref<1x8x32xf32, #tpu.memory_space<vmem>>, %arg10: memref<8x32xbf16, #tpu.memory_space<vmem>>, %arg11: memref<8x4xf32, #tpu.memory_space<vmem>>, %arg12: memref<8x4xf32, #tpu.memory_space<vmem>>, %arg13: memref<8x32xf32, #tpu.memory_space<vmem>>) attributes {dimension_semantics = [#tpu.dimension_semantics<parallel>, #tpu.dimension_semantics<parallel>, #tpu.dimension_semantics<arbitrary>], iteration_bounds = array<i64: 2, 1, 1>, scalar_prefetch = 0 : i64, scratch_operands = 4 : i64, tpu.core_type = #tpu.core_type<tc>, window_params = [{transform_indices = @transform_0, window_bounds = array<i64: 1, 8, 32>}, {transform_indices = @transform_1, window_bounds = array<i64: 1, 16, 64>}, {transform_indices = @transform_2, window_bounds = array<i64: 8, 4>}, {transform_indices = @transform_3, window_bounds = array<i64: 8, 4>}, {transform_indices = @transform_4, window_bounds = array<i64: 16, 4>}, {transform_indices = @transform_5, window_bounds = array<i64: 16, 4>}, {transform_indices = @transform_6, window_bounds = array<i64: 1, 8, 32>}]} {
    %c0_i32 = arith.constant 0 : i32
    %0 = arith.cmpi eq, %arg2, %c0_i32 : i32
    %1 = arith.extui %0 : i1 to i32
    %c0_i32_0 = arith.constant 0 : i32
    %2 = arith.cmpi ne, %1, %c0_i32_0 : i32
    scf.if %2 {
      %c0_38 = arith.constant 0 : index
      %c0_39 = arith.constant 0 : index
      %c0_40 = arith.constant 0 : index
      %153 = vector.load %arg3[%c0_38, %c0_39, %c0_40] : memref<1x8x32xf32, #tpu.memory_space<vmem>>, vector<1x8x32xf32>
      %154 = vector.shape_cast %153 : vector<1x8x32xf32> to vector<8x32xf32>
      %c0_41 = arith.constant 0 : index
      %c0_42 = arith.constant 0 : index
      %155 = vector.load %arg5[%c0_41, %c0_42] : memref<8x4xf32, #tpu.memory_space<vmem>>, vector<8x4xf32>
      %c0_43 = arith.constant 0 : index
      %c0_44 = arith.constant 0 : index
      %156 = vector.load %arg6[%c0_43, %c0_44] : memref<8x4xf32, #tpu.memory_space<vmem>>, vector<8x4xf32>
      %157 = vector.extract_strided_slice %154 {offsets = [0, 0], sizes = [8, 4], strides = [1, 1]} : vector<8x32xf32> to vector<8x4xf32>
      %158 = vector.extract_strided_slice %154 {offsets = [0, 4], sizes = [8, 4], strides = [1, 1]} : vector<8x32xf32> to vector<8x4xf32>
      %159 = arith.mulf %157, %155 : vector<8x4xf32>
      %160 = arith.mulf %158, %156 : vector<8x4xf32>
      %161 = arith.subf %159, %160 : vector<8x4xf32>
      %162 = arith.mulf %157, %156 : vector<8x4xf32>
      %163 = arith.mulf %158, %155 : vector<8x4xf32>
      %164 = arith.addf %162, %163 : vector<8x4xf32>
      %165 = vector.extract_strided_slice %154 {offsets = [0, 8], sizes = [8, 4], strides = [1, 1]} : vector<8x32xf32> to vector<8x4xf32>
      %166 = vector.extract_strided_slice %154 {offsets = [0, 12], sizes = [8, 4], strides = [1, 1]} : vector<8x32xf32> to vector<8x4xf32>
      %167 = arith.mulf %165, %155 : vector<8x4xf32>
      %168 = arith.mulf %166, %156 : vector<8x4xf32>
      %169 = arith.subf %167, %168 : vector<8x4xf32>
      %170 = arith.mulf %165, %156 : vector<8x4xf32>
      %171 = arith.mulf %166, %155 : vector<8x4xf32>
      %172 = arith.addf %170, %171 : vector<8x4xf32>
      %173 = vector.extract_strided_slice %154 {offsets = [0, 16], sizes = [8, 4], strides = [1, 1]} : vector<8x32xf32> to vector<8x4xf32>
      %174 = vector.extract_strided_slice %154 {offsets = [0, 20], sizes = [8, 4], strides = [1, 1]} : vector<8x32xf32> to vector<8x4xf32>
      %175 = arith.mulf %173, %155 : vector<8x4xf32>
      %176 = arith.mulf %174, %156 : vector<8x4xf32>
      %177 = arith.subf %175, %176 : vector<8x4xf32>
      %178 = arith.mulf %173, %156 : vector<8x4xf32>
      %179 = arith.mulf %174, %155 : vector<8x4xf32>
      %180 = arith.addf %178, %179 : vector<8x4xf32>
      %181 = vector.extract_strided_slice %154 {offsets = [0, 24], sizes = [8, 4], strides = [1, 1]} : vector<8x32xf32> to vector<8x4xf32>
      %182 = vector.extract_strided_slice %154 {offsets = [0, 28], sizes = [8, 4], strides = [1, 1]} : vector<8x32xf32> to vector<8x4xf32>
      %183 = arith.mulf %181, %155 : vector<8x4xf32>
      %184 = arith.mulf %182, %156 : vector<8x4xf32>
      %185 = arith.subf %183, %184 : vector<8x4xf32>
      %186 = arith.mulf %181, %156 : vector<8x4xf32>
      %187 = arith.mulf %182, %155 : vector<8x4xf32>
      %188 = arith.addf %186, %187 : vector<8x4xf32>
      %189 = tpu.concatenate %161, %164, %169, %172, %177, %180, %185, %188 in 1 : vector<8x4xf32>, vector<8x4xf32>, vector<8x4xf32>, vector<8x4xf32>, vector<8x4xf32>, vector<8x4xf32>, vector<8x4xf32>, vector<8x4xf32> -> vector<8x32xf32>
      %190 = arith.truncf %189 : vector<8x32xf32> to vector<8x32xbf16>
      %c0_45 = arith.constant 0 : index
      %c0_46 = arith.constant 0 : index
      %191 = vector.load %arg10[%c0_45, %c0_46] : memref<8x32xbf16, #tpu.memory_space<vmem>>, vector<8x32xbf16>
      tpu.vector_store %arg10[%c0_45, %c0_46], %190 {strides = array<i32>} : memref<8x32xbf16, #tpu.memory_space<vmem>>, vector<8x32xbf16>,
      %cst_47 = arith.constant 0xFF800000 : f32
      %192 = vector.broadcast %cst_47 : f32 to vector<8x4xf32>
      %c0_48 = arith.constant 0 : index
      %c0_49 = arith.constant 0 : index
      %193 = vector.load %arg11[%c0_48, %c0_49] : memref<8x4xf32, #tpu.memory_space<vmem>>, vector<8x4xf32>
      tpu.vector_store %arg11[%c0_48, %c0_49], %192 {strides = array<i32>} : memref<8x4xf32, #tpu.memory_space<vmem>>, vector<8x4xf32>,
      %cst_50 = arith.constant 0.000000e+00 : f32
      %194 = vector.broadcast %cst_50 : f32 to vector<8x4xf32>
      %c0_51 = arith.constant 0 : index
      %c0_52 = arith.constant 0 : index
      %195 = vector.load %arg12[%c0_51, %c0_52] : memref<8x4xf32, #tpu.memory_space<vmem>>, vector<8x4xf32>
      tpu.vector_store %arg12[%c0_51, %c0_52], %194 {strides = array<i32>} : memref<8x4xf32, #tpu.memory_space<vmem>>, vector<8x4xf32>,
      %cst_53 = arith.constant 0.000000e+00 : f32
      %196 = vector.broadcast %cst_53 : f32 to vector<8x32xf32>
      %c0_54 = arith.constant 0 : index
      %c0_55 = arith.constant 0 : index
      %197 = vector.load %arg13[%c0_54, %c0_55] : memref<8x32xf32, #tpu.memory_space<vmem>>, vector<8x32xf32>
      tpu.vector_store %arg13[%c0_54, %c0_55], %196 {strides = array<i32>} : memref<8x32xf32, #tpu.memory_space<vmem>>, vector<8x32xf32>,
    } else {
    }
    %c0 = arith.constant 0 : index
    %c0_1 = arith.constant 0 : index
    %c0_2 = arith.constant 0 : index
    %3 = vector.load %arg4[%c0, %c0_1, %c0_2] : memref<1x16x64xf32, #tpu.memory_space<vmem>>, vector<1x16x64xf32>
    %4 = vector.shape_cast %3 : vector<1x16x64xf32> to vector<16x64xf32>
    %5 = vector.extract_strided_slice %4 {offsets = [0, 0], sizes = [16, 32], strides = [1, 1]} : vector<16x64xf32> to vector<16x32xf32>
    %6 = vector.extract_strided_slice %4 {offsets = [0, 32], sizes = [16, 32], strides = [1, 1]} : vector<16x64xf32> to vector<16x32xf32>
    %7 = arith.truncf %6 : vector<16x32xf32> to vector<16x32xbf16>
    %c0_3 = arith.constant 0 : index
    %c0_4 = arith.constant 0 : index
    %8 = vector.load %arg7[%c0_3, %c0_4] : memref<16x4xf32, #tpu.memory_space<vmem>>, vector<16x4xf32>
    %c0_5 = arith.constant 0 : index
    %c0_6 = arith.constant 0 : index
    %9 = vector.load %arg8[%c0_5, %c0_6] : memref<16x4xf32, #tpu.memory_space<vmem>>, vector<16x4xf32>
    %10 = vector.extract_strided_slice %5 {offsets = [0, 0], sizes = [16, 4], strides = [1, 1]} : vector<16x32xf32> to vector<16x4xf32>
    %11 = vector.extract_strided_slice %5 {offsets = [0, 4], sizes = [16, 4], strides = [1, 1]} : vector<16x32xf32> to vector<16x4xf32>
    %12 = arith.mulf %10, %8 : vector<16x4xf32>
    %13 = arith.mulf %11, %9 : vector<16x4xf32>
    %14 = arith.subf %12, %13 : vector<16x4xf32>
    %15 = arith.mulf %10, %9 : vector<16x4xf32>
    %16 = arith.mulf %11, %8 : vector<16x4xf32>
    %17 = arith.addf %15, %16 : vector<16x4xf32>
    %18 = vector.extract_strided_slice %5 {offsets = [0, 8], sizes = [16, 4], strides = [1, 1]} : vector<16x32xf32> to vector<16x4xf32>
    %19 = vector.extract_strided_slice %5 {offsets = [0, 12], sizes = [16, 4], strides = [1, 1]} : vector<16x32xf32> to vector<16x4xf32>
    %20 = arith.mulf %18, %8 : vector<16x4xf32>
    %21 = arith.mulf %19, %9 : vector<16x4xf32>
    %22 = arith.subf %20, %21 : vector<16x4xf32>
    %23 = arith.mulf %18, %9 : vector<16x4xf32>
    %24 = arith.mulf %19, %8 : vector<16x4xf32>
    %25 = arith.addf %23, %24 : vector<16x4xf32>
    %26 = vector.extract_strided_slice %5 {offsets = [0, 16], sizes = [16, 4], strides = [1, 1]} : vector<16x32xf32> to vector<16x4xf32>
    %27 = vector.extract_strided_slice %5 {offsets = [0, 20], sizes = [16, 4], strides = [1, 1]} : vector<16x32xf32> to vector<16x4xf32>
    %28 = arith.mulf %26, %8 : vector<16x4xf32>
    %29 = arith.mulf %27, %9 : vector<16x4xf32>
    %30 = arith.subf %28, %29 : vector<16x4xf32>
    %31 = arith.mulf %26, %9 : vector<16x4xf32>
    %32 = arith.mulf %27, %8 : vector<16x4xf32>
    %33 = arith.addf %31, %32 : vector<16x4xf32>
    %34 = vector.extract_strided_slice %5 {offsets = [0, 24], sizes = [16, 4], strides = [1, 1]} : vector<16x32xf32> to vector<16x4xf32>
    %35 = vector.extract_strided_slice %5 {offsets = [0, 28], sizes = [16, 4], strides = [1, 1]} : vector<16x32xf32> to vector<16x4xf32>
    %36 = arith.mulf %34, %8 : vector<16x4xf32>
    %37 = arith.mulf %35, %9 : vector<16x4xf32>
    %38 = arith.subf %36, %37 : vector<16x4xf32>
    %39 = arith.mulf %34, %9 : vector<16x4xf32>
    %40 = arith.mulf %35, %8 : vector<16x4xf32>
    %41 = arith.addf %39, %40 : vector<16x4xf32>
    %42 = tpu.concatenate %14, %17, %22, %25, %30, %33, %38, %41 in 1 : vector<16x4xf32>, vector<16x4xf32>, vector<16x4xf32>, vector<16x4xf32>, vector<16x4xf32>, vector<16x4xf32>, vector<16x4xf32>, vector<16x4xf32> -> vector<16x32xf32>
    %43 = arith.truncf %42 : vector<16x32xf32> to vector<16x32xbf16>
    %c0_7 = arith.constant 0 : index
    %c0_8 = arith.constant 0 : index
    %44 = vector.load %arg10[%c0_7, %c0_8] : memref<8x32xbf16, #tpu.memory_space<vmem>>, vector<8x32xbf16>
    %c0_9 = arith.constant 0 : index
    %c0_10 = arith.constant 0 : index
    %45 = vector.load %arg11[%c0_9, %c0_10] : memref<8x4xf32, #tpu.memory_space<vmem>>, vector<8x4xf32>
    %c0_11 = arith.constant 0 : index
    %c0_12 = arith.constant 0 : index
    %46 = vector.load %arg12[%c0_11, %c0_12] : memref<8x4xf32, #tpu.memory_space<vmem>>, vector<8x4xf32>
    %c0_13 = arith.constant 0 : index
    %c0_14 = arith.constant 0 : index
    %47 = vector.load %arg13[%c0_13, %c0_14] : memref<8x32xf32, #tpu.memory_space<vmem>>, vector<8x32xf32>
    %48 = vector.extract_strided_slice %44 {offsets = [0, 0], sizes = [8, 8], strides = [1, 1]} : vector<8x32xbf16> to vector<8x8xbf16>
    %49 = vector.extract_strided_slice %43 {offsets = [0, 0], sizes = [16, 8], strides = [1, 1]} : vector<16x32xbf16> to vector<16x8xbf16>
    %cst = arith.constant dense<0.000000e+00> : vector<8x16xf32>
    %50 = tpu.matmul %48, %49, %cst {dimension_numbers = #tpu.dot_dimension_numbers<[1], [1], [0], [0], [0, 0, 1, 0], [], []>} : vector<8x8xbf16>, vector<16x8xbf16>, vector<8x16xf32> -> vector<8x16xf32>
    %51 = vector.extract_strided_slice %45 {offsets = [0, 0], sizes = [8, 1], strides = [1, 1]} : vector<8x4xf32> to vector<8x1xf32>
    %cst_15 = arith.constant dense<0xFF800000> : vector<8xf32>
    %52 = vector.multi_reduction <maximumf>, %50, %cst_15 [1] : vector<8x16xf32> to vector<8xf32>
    %53 = vector.shape_cast %52 : vector<8xf32> to vector<8x1xf32>
    %54 = arith.maximumf %51, %53 : vector<8x1xf32>
    %55 = arith.subf %51, %54 : vector<8x1xf32>
    %56 = math.exp %55 : vector<8x1xf32>
    %57 = vector.broadcast %54 : vector<8x1xf32> to vector<8x16xf32>
    %58 = arith.subf %50, %57 : vector<8x16xf32>
    %59 = math.exp %58 : vector<8x16xf32>
    %60 = vector.extract_strided_slice %46 {offsets = [0, 0], sizes = [8, 1], strides = [1, 1]} : vector<8x4xf32> to vector<8x1xf32>
    %61 = arith.mulf %56, %60 : vector<8x1xf32>
    %cst_16 = arith.constant dense<0.000000e+00> : vector<8xf32>
    %62 = vector.multi_reduction <add>, %59, %cst_16 [1] : vector<8x16xf32> to vector<8xf32>
    %63 = vector.shape_cast %62 : vector<8xf32> to vector<8x1xf32>
    %64 = arith.addf %61, %63 : vector<8x1xf32>
    %65 = arith.truncf %59 : vector<8x16xf32> to vector<8x16xbf16>
    %66 = vector.extract_strided_slice %7 {offsets = [0, 0], sizes = [16, 8], strides = [1, 1]} : vector<16x32xbf16> to vector<16x8xbf16>
    %cst_17 = arith.constant dense<0.000000e+00> : vector<8x8xf32>
    %67 = tpu.matmul %65, %66, %cst_17 {dimension_numbers = #tpu.dot_dimension_numbers<[1], [0], [0], [1], [0, 0, 1, 1], [], []>} : vector<8x16xbf16>, vector<16x8xbf16>, vector<8x8xf32> -> vector<8x8xf32>
    %68 = vector.extract_strided_slice %47 {offsets = [0, 0], sizes = [8, 8], strides = [1, 1]} : vector<8x32xf32> to vector<8x8xf32>
    %69 = vector.broadcast %56 : vector<8x1xf32> to vector<8x8xf32>
    %70 = arith.mulf %69, %68 : vector<8x8xf32>
    %71 = arith.addf %70, %67 : vector<8x8xf32>
    %72 = vector.extract_strided_slice %44 {offsets = [0, 8], sizes = [8, 8], strides = [1, 1]} : vector<8x32xbf16> to vector<8x8xbf16>
    %73 = vector.extract_strided_slice %43 {offsets = [0, 8], sizes = [16, 8], strides = [1, 1]} : vector<16x32xbf16> to vector<16x8xbf16>
    %cst_18 = arith.constant dense<0.000000e+00> : vector<8x16xf32>
    %74 = tpu.matmul %72, %73, %cst_18 {dimension_numbers = #tpu.dot_dimension_numbers<[1], [1], [0], [0], [0, 0, 1, 0], [], []>} : vector<8x8xbf16>, vector<16x8xbf16>, vector<8x16xf32> -> vector<8x16xf32>
    %75 = vector.extract_strided_slice %45 {offsets = [0, 1], sizes = [8, 1], strides = [1, 1]} : vector<8x4xf32> to vector<8x1xf32>
    %cst_19 = arith.constant dense<0xFF800000> : vector<8xf32>
    %76 = vector.multi_reduction <maximumf>, %74, %cst_19 [1] : vector<8x16xf32> to vector<8xf32>
    %77 = vector.shape_cast %76 : vector<8xf32> to vector<8x1xf32>
    %78 = arith.maximumf %75, %77 : vector<8x1xf32>
    %79 = arith.subf %75, %78 : vector<8x1xf32>
    %80 = math.exp %79 : vector<8x1xf32>
    %81 = vector.broadcast %78 : vector<8x1xf32> to vector<8x16xf32>
    %82 = arith.subf %74, %81 : vector<8x16xf32>
    %83 = math.exp %82 : vector<8x16xf32>
    %84 = vector.extract_strided_slice %46 {offsets = [0, 1], sizes = [8, 1], strides = [1, 1]} : vector<8x4xf32> to vector<8x1xf32>
    %85 = arith.mulf %80, %84 : vector<8x1xf32>
    %cst_20 = arith.constant dense<0.000000e+00> : vector<8xf32>
    %86 = vector.multi_reduction <add>, %83, %cst_20 [1] : vector<8x16xf32> to vector<8xf32>
    %87 = vector.shape_cast %86 : vector<8xf32> to vector<8x1xf32>
    %88 = arith.addf %85, %87 : vector<8x1xf32>
    %89 = arith.truncf %83 : vector<8x16xf32> to vector<8x16xbf16>
    %90 = vector.extract_strided_slice %7 {offsets = [0, 8], sizes = [16, 8], strides = [1, 1]} : vector<16x32xbf16> to vector<16x8xbf16>
    %cst_21 = arith.constant dense<0.000000e+00> : vector<8x8xf32>
    %91 = tpu.matmul %89, %90, %cst_21 {dimension_numbers = #tpu.dot_dimension_numbers<[1], [0], [0], [1], [0, 0, 1, 1], [], []>} : vector<8x16xbf16>, vector<16x8xbf16>, vector<8x8xf32> -> vector<8x8xf32>
    %92 = vector.extract_strided_slice %47 {offsets = [0, 8], sizes = [8, 8], strides = [1, 1]} : vector<8x32xf32> to vector<8x8xf32>
    %93 = vector.broadcast %80 : vector<8x1xf32> to vector<8x8xf32>
    %94 = arith.mulf %93, %92 : vector<8x8xf32>
    %95 = arith.addf %94, %91 : vector<8x8xf32>
    %96 = vector.extract_strided_slice %44 {offsets = [0, 16], sizes = [8, 8], strides = [1, 1]} : vector<8x32xbf16> to vector<8x8xbf16>
    %97 = vector.extract_strided_slice %43 {offsets = [0, 16], sizes = [16, 8], strides = [1, 1]} : vector<16x32xbf16> to vector<16x8xbf16>
    %cst_22 = arith.constant dense<0.000000e+00> : vector<8x16xf32>
    %98 = tpu.matmul %96, %97, %cst_22 {dimension_numbers = #tpu.dot_dimension_numbers<[1], [1], [0], [0], [0, 0, 1, 0], [], []>} : vector<8x8xbf16>, vector<16x8xbf16>, vector<8x16xf32> -> vector<8x16xf32>
    %99 = vector.extract_strided_slice %45 {offsets = [0, 2], sizes = [8, 1], strides = [1, 1]} : vector<8x4xf32> to vector<8x1xf32>
    %cst_23 = arith.constant dense<0xFF800000> : vector<8xf32>
    %100 = vector.multi_reduction <maximumf>, %98, %cst_23 [1] : vector<8x16xf32> to vector<8xf32>
    %101 = vector.shape_cast %100 : vector<8xf32> to vector<8x1xf32>
    %102 = arith.maximumf %99, %101 : vector<8x1xf32>
    %103 = arith.subf %99, %102 : vector<8x1xf32>
    %104 = math.exp %103 : vector<8x1xf32>
    %105 = vector.broadcast %102 : vector<8x1xf32> to vector<8x16xf32>
    %106 = arith.subf %98, %105 : vector<8x16xf32>
    %107 = math.exp %106 : vector<8x16xf32>
    %108 = vector.extract_strided_slice %46 {offsets = [0, 2], sizes = [8, 1], strides = [1, 1]} : vector<8x4xf32> to vector<8x1xf32>
    %109 = arith.mulf %104, %108 : vector<8x1xf32>
    %cst_24 = arith.constant dense<0.000000e+00> : vector<8xf32>
    %110 = vector.multi_reduction <add>, %107, %cst_24 [1] : vector<8x16xf32> to vector<8xf32>
    %111 = vector.shape_cast %110 : vector<8xf32> to vector<8x1xf32>
    %112 = arith.addf %109, %111 : vector<8x1xf32>
    %113 = arith.truncf %107 : vector<8x16xf32> to vector<8x16xbf16>
    %114 = vector.extract_strided_slice %7 {offsets = [0, 16], sizes = [16, 8], strides = [1, 1]} : vector<16x32xbf16> to vector<16x8xbf16>
    %cst_25 = arith.constant dense<0.000000e+00> : vector<8x8xf32>
    %115 = tpu.matmul %113, %114, %cst_25 {dimension_numbers = #tpu.dot_dimension_numbers<[1], [0], [0], [1], [0, 0, 1, 1], [], []>} : vector<8x16xbf16>, vector<16x8xbf16>, vector<8x8xf32> -> vector<8x8xf32>
    %116 = vector.extract_strided_slice %47 {offsets = [0, 16], sizes = [8, 8], strides = [1, 1]} : vector<8x32xf32> to vector<8x8xf32>
    %117 = vector.broadcast %104 : vector<8x1xf32> to vector<8x8xf32>
    %118 = arith.mulf %117, %116 : vector<8x8xf32>
    %119 = arith.addf %118, %115 : vector<8x8xf32>
    %120 = vector.extract_strided_slice %44 {offsets = [0, 24], sizes = [8, 8], strides = [1, 1]} : vector<8x32xbf16> to vector<8x8xbf16>
    %121 = vector.extract_strided_slice %43 {offsets = [0, 24], sizes = [16, 8], strides = [1, 1]} : vector<16x32xbf16> to vector<16x8xbf16>
    %cst_26 = arith.constant dense<0.000000e+00> : vector<8x16xf32>
    %122 = tpu.matmul %120, %121, %cst_26 {dimension_numbers = #tpu.dot_dimension_numbers<[1], [1], [0], [0], [0, 0, 1, 0], [], []>} : vector<8x8xbf16>, vector<16x8xbf16>, vector<8x16xf32> -> vector<8x16xf32>
    %123 = vector.extract_strided_slice %45 {offsets = [0, 3], sizes = [8, 1], strides = [1, 1]} : vector<8x4xf32> to vector<8x1xf32>
    %cst_27 = arith.constant dense<0xFF800000> : vector<8xf32>
    %124 = vector.multi_reduction <maximumf>, %122, %cst_27 [1] : vector<8x16xf32> to vector<8xf32>
    %125 = vector.shape_cast %124 : vector<8xf32> to vector<8x1xf32>
    %126 = arith.maximumf %123, %125 : vector<8x1xf32>
    %127 = arith.subf %123, %126 : vector<8x1xf32>
    %128 = math.exp %127 : vector<8x1xf32>
    %129 = vector.broadcast %126 : vector<8x1xf32> to vector<8x16xf32>
    %130 = arith.subf %122, %129 : vector<8x16xf32>
    %131 = math.exp %130 : vector<8x16xf32>
    %132 = vector.extract_strided_slice %46 {offsets = [0, 3], sizes = [8, 1], strides = [1, 1]} : vector<8x4xf32> to vector<8x1xf32>
    %133 = arith.mulf %128, %132 : vector<8x1xf32>
    %cst_28 = arith.constant dense<0.000000e+00> : vector<8xf32>
    %134 = vector.multi_reduction <add>, %131, %cst_28 [1] : vector<8x16xf32> to vector<8xf32>
    %135 = vector.shape_cast %134 : vector<8xf32> to vector<8x1xf32>
    %136 = arith.addf %133, %135 : vector<8x1xf32>
    %137 = arith.truncf %131 : vector<8x16xf32> to vector<8x16xbf16>
    %138 = vector.extract_strided_slice %7 {offsets = [0, 24], sizes = [16, 8], strides = [1, 1]} : vector<16x32xbf16> to vector<16x8xbf16>
    %cst_29 = arith.constant dense<0.000000e+00> : vector<8x8xf32>
    %139 = tpu.matmul %137, %138, %cst_29 {dimension_numbers = #tpu.dot_dimension_numbers<[1], [0], [0], [1], [0, 0, 1, 1], [], []>} : vector<8x16xbf16>, vector<16x8xbf16>, vector<8x8xf32> -> vector<8x8xf32>
    %140 = vector.extract_strided_slice %47 {offsets = [0, 24], sizes = [8, 8], strides = [1, 1]} : vector<8x32xf32> to vector<8x8xf32>
    %141 = vector.broadcast %128 : vector<8x1xf32> to vector<8x8xf32>
    %142 = arith.mulf %141, %140 : vector<8x8xf32>
    %143 = arith.addf %142, %139 : vector<8x8xf32>
    %144 = tpu.concatenate %54, %78, %102, %126 in 1 : vector<8x1xf32>, vector<8x1xf32>, vector<8x1xf32>, vector<8x1xf32> -> vector<8x4xf32>
    %c0_30 = arith.constant 0 : index
    %c0_31 = arith.constant 0 : index
    %145 = vector.load %arg11[%c0_30, %c0_31] : memref<8x4xf32, #tpu.memory_space<vmem>>, vector<8x4xf32>
    tpu.vector_store %arg11[%c0_30, %c0_31], %144 {strides = array<i32>} : memref<8x4xf32, #tpu.memory_space<vmem>>, vector<8x4xf32>,
    %146 = tpu.concatenate %64, %88, %112, %136 in 1 : vector<8x1xf32>, vector<8x1xf32>, vector<8x1xf32>, vector<8x1xf32> -> vector<8x4xf32>
    %c0_32 = arith.constant 0 : index
    %c0_33 = arith.constant 0 : index
    %147 = vector.load %arg12[%c0_32, %c0_33] : memref<8x4xf32, #tpu.memory_space<vmem>>, vector<8x4xf32>
    tpu.vector_store %arg12[%c0_32, %c0_33], %146 {strides = array<i32>} : memref<8x4xf32, #tpu.memory_space<vmem>>, vector<8x4xf32>,
    %148 = tpu.concatenate %71, %95, %119, %143 in 1 : vector<8x8xf32>, vector<8x8xf32>, vector<8x8xf32>, vector<8x8xf32> -> vector<8x32xf32>
    %c0_34 = arith.constant 0 : index
    %c0_35 = arith.constant 0 : index
    %149 = vector.load %arg13[%c0_34, %c0_35] : memref<8x32xf32, #tpu.memory_space<vmem>>, vector<8x32xf32>
    tpu.vector_store %arg13[%c0_34, %c0_35], %148 {strides = array<i32>} : memref<8x32xf32, #tpu.memory_space<vmem>>, vector<8x32xf32>,
    %c0_i32_36 = arith.constant 0 : i32
    %150 = arith.cmpi eq, %arg2, %c0_i32_36 : i32
    %151 = arith.extui %150 : i1 to i32
    %c0_i32_37 = arith.constant 0 : i32
    %152 = arith.cmpi ne, %151, %c0_i32_37 : i32
    scf.if %152 {
      %c0_38 = arith.constant 0 : index
      %c0_39 = arith.constant 0 : index
      %153 = vector.load %arg12[%c0_38, %c0_39] : memref<8x4xf32, #tpu.memory_space<vmem>>, vector<8x4xf32>
      %154 = tpu.reciprocal %153 {approx = true} : vector<8x4xf32> -> vector<8x4xf32>
      %c0_40 = arith.constant 0 : index
      %c0_41 = arith.constant 0 : index
      %155 = vector.load %arg13[%c0_40, %c0_41] : memref<8x32xf32, #tpu.memory_space<vmem>>, vector<8x32xf32>
      %156 = vector.extract_strided_slice %155 {offsets = [0, 0], sizes = [8, 8], strides = [1, 1]} : vector<8x32xf32> to vector<8x8xf32>
      %157 = vector.extract_strided_slice %154 {offsets = [0, 0], sizes = [8, 1], strides = [1, 1]} : vector<8x4xf32> to vector<8x1xf32>
      %158 = vector.broadcast %157 : vector<8x1xf32> to vector<8x8xf32>
      %159 = arith.mulf %156, %158 : vector<8x8xf32>
      %160 = vector.extract_strided_slice %155 {offsets = [0, 8], sizes = [8, 8], strides = [1, 1]} : vector<8x32xf32> to vector<8x8xf32>
      %161 = vector.extract_strided_slice %154 {offsets = [0, 1], sizes = [8, 1], strides = [1, 1]} : vector<8x4xf32> to vector<8x1xf32>
      %162 = vector.broadcast %161 : vector<8x1xf32> to vector<8x8xf32>
      %163 = arith.mulf %160, %162 : vector<8x8xf32>
      %164 = vector.extract_strided_slice %155 {offsets = [0, 16], sizes = [8, 8], strides = [1, 1]} : vector<8x32xf32> to vector<8x8xf32>
      %165 = vector.extract_strided_slice %154 {offsets = [0, 2], sizes = [8, 1], strides = [1, 1]} : vector<8x4xf32> to vector<8x1xf32>
      %166 = vector.broadcast %165 : vector<8x1xf32> to vector<8x8xf32>
      %167 = arith.mulf %164, %166 : vector<8x8xf32>
      %168 = vector.extract_strided_slice %155 {offsets = [0, 24], sizes = [8, 8], strides = [1, 1]} : vector<8x32xf32> to vector<8x8xf32>
      %169 = vector.extract_strided_slice %154 {offsets = [0, 3], sizes = [8, 1], strides = [1, 1]} : vector<8x4xf32> to vector<8x1xf32>
      %170 = vector.broadcast %169 : vector<8x1xf32> to vector<8x8xf32>
      %171 = arith.mulf %168, %170 : vector<8x8xf32>
      %172 = tpu.concatenate %159, %163, %167, %171 in 1 : vector<8x8xf32>, vector<8x8xf32>, vector<8x8xf32>, vector<8x8xf32> -> vector<8x32xf32>
      %c0_42 = arith.constant 0 : index
      %c0_43 = arith.constant 0 : index
      %c0_44 = arith.constant 0 : index
      %173 = vector.load %arg9[%c0_42, %c0_43, %c0_44] : memref<1x8x32xf32, #tpu.memory_space<vmem>>, vector<1x8x32xf32>
      %174 = vector.shape_cast %173 : vector<1x8x32xf32> to vector<8x32xf32>
      %175 = vector.shape_cast %172 : vector<8x32xf32> to vector<1x8x32xf32>
      tpu.vector_store %arg9[%c0_42, %c0_43, %c0_44], %175 {strides = array<i32>} : memref<1x8x32xf32, #tpu.memory_space<vmem>>, vector<1x8x32xf32>,
    } else {
    }
    return
  }
  func.func @transform_0(%arg0: i32, %arg1: i32, %arg2: i32) -> (i32, i32, i32) {
    %c0_i32 = arith.constant 0 : i32
    %c0_i32_0 = arith.constant 0 : i32
    return %arg0, %arg1, %c0_i32 : i32, i32, i32
  }
  func.func @transform_1(%arg0: i32, %arg1: i32, %arg2: i32) -> (i32, i32, i32) {
    %c0_i32 = arith.constant 0 : i32
    %c0_i32_0 = arith.constant 0 : i32
    return %arg0, %arg2, %c0_i32 : i32, i32, i32
  }
  func.func @transform_2(%arg0: i32, %arg1: i32, %arg2: i32) -> (i32, i32) {
    %c0_i32 = arith.constant 0 : i32
    %c0_i32_0 = arith.constant 0 : i32
    return %arg1, %c0_i32 : i32, i32
  }
  func.func @transform_3(%arg0: i32, %arg1: i32, %arg2: i32) -> (i32, i32) {
    %c0_i32 = arith.constant 0 : i32
    %c0_i32_0 = arith.constant 0 : i32
    return %arg1, %c0_i32 : i32, i32
  }
  func.func @transform_4(%arg0: i32, %arg1: i32, %arg2: i32) -> (i32, i32) {
    %c0_i32 = arith.constant 0 : i32
    %c0_i32_0 = arith.constant 0 : i32
    return %arg2, %c0_i32 : i32, i32
  }
  func.func @transform_5(%arg0: i32, %arg1: i32, %arg2: i32) -> (i32, i32) {
    %c0_i32 = arith.constant 0 : i32
    %c0_i32_0 = arith.constant 0 : i32
    return %arg2, %c0_i32 : i32, i32
  }
  func.func @transform_6(%arg0: i32, %arg1: i32, %arg2: i32) -> (i32, i32, i32) {
    %c0_i32 = arith.constant 0 : i32
    %c0_i32_0 = arith.constant 0 : i32
    return %arg0, %arg1, %c0_i32 : i32, i32, i32
  }
}

</mosaic_0001>

<bundles_post_ra>
// kernel: bert_attention_forward.4
= control target key start
LH: loop header
LB: loop body
LE: loop exit
PB: predicated region body
PF: predicated region fallthrough
CT: control target
= control target key end

     0   :  { %s487_s12 = smov 0   ;;  %s489_s13 = smov 0   ;;  %s529_s0 = inlined_call_operand.vmem [shape: f32[16,32], index: 0, kind: input, shape index: {}]   ;;  %s530_s1 = inlined_call_operand.vmem [shape: bf16[32,32], index: 1, kind: input, shape index: {}]   ;;  %s531_s2 = inlined_call_operand.vmem [shape: f32[1,32], index: 2, kind: input, shape index: {}]   ;;  %s532_s3 = inlined_call_operand.vmem [shape: f32[16,32], index: 3, kind: output, shape index: {}]  }
   0x1   :  { %s491_s14 = smov 0  }
   0x2 LB: > { %s22_s15 = sadd.s32 1, %s459_s13  ;;  %p393_p0 = scmp.ge.s32.totalorder %s463_s14, 1  ;;  %s463_s14 = sphi %s491_s14, %s13_s14   ;;  %s459_s13 = sphi %s489_s13, %s534_s13   ;;  %s455_s12 = sphi %s487_s12, %s533_s12  }
   0x3   : > { %p23_p1 = scmp.ge.s32.totalorder %s22_s15, 2  ;;  %p167_p2 = scmp.lt.s32.totalorder %s463_s14, 3 }
   0x5   : > { %s536_s15 = smov (%p23_p1, %s22_s15), 0  ;;  %p168_p3 = pnand %p393_p0, %p167_p2 }
   0x6   : > { %v439_v0 = vld [vmem:[%s530_s1] sm:$0xff] (!%p168_p3)   ;;  %v465_v1 = vmov (!%p168_p3), 0.0   ;;  %v440_v2 = vld [vmem:[%s530_s1 + $0x8] sm:$0xff] (!%p168_p3)   ;;  %vm466_vm0 = vmmov (!%p168_p3), 0   ;;  %p199_p4 = scmp.lt.s32.totalorder (!%p168_p3), %s455_s12, 1  ;;  %vm243_vm1 = vcmask (!%p168_p3), 261120  }
   0x7   : > { %171 = sbr.rel (%p168_p3) target bundleno = 235 (0xeb), region = 32  ;;  %405 = vmatprep.subr.bf16.mxu0 (!%p168_p3), %v465_v1  ;;  %409 = vmatprep.mubr.msk.bf16.mxu0 (!%p168_p3), %vm466_vm0, %v465_v1  ;;  %v396_v5 = vld [vmem:[%s531_s2] ss:$0 sm:$0xff] (!%p168_p3) }
   0x8   : > { %406 = vmatpush3.bf16.msra.mxu0 (!%p168_p3), %v439_v0 }
   0x9   : > { %407 = vmatprep.subr.bf16.mxu0 (!%p168_p3), %v465_v1 }
   0xc   : > { %408 = vmatpush3.bf16.msra.mxu0 (!%p168_p3), %v440_v2 }
   0xe   : > { %s538_s12 = smov (!%p199_p4, %s455_s12), 1 }
   0xf   : > { %s394_s20 = sshll.u32 %s538_s12, 3 }
  0x10   : > { %s202_s23 = scalar_lea.vmem %s529_s0, %s394_s20  ;;  %s216_s28 = scalar_lea.vmem %s532_s3, %s394_s20 }
  0x11   : > { %v218_v3 = vld [vmem:[%s202_s23] sm:$0xff] }
  0x12   : > { %v219_v4 = vpack.c.bf16 %v218_v3, %v218_v3 }
  0x14   : > { %410 = vmatmul.mubr.msk.bf16.vlgmr.msra.gmra.mrb[0].mxu0 %vm243_vm1, %v219_v4 }
  0xe7   : > { %v281_v6 = vpop.f32.mrb[0].mxu0 }
  0xe8   : > { %v282_v7 = vadd.f32 %v396_v5, %v281_v6  ;;  %v411_v8 = vpop.f32.mrb[1].mxu0 }
  0xe9   : > { %v284_v9 = vpop.f32.mrb[2].mxu0 }
  0xea   : > { %287 = vst.msk [vmem:[%s216_s28] sm:$0xff] %vm243_vm1, %v282_v7  ;;  %v412_v10 = vpop.f32.mrb[3].mxu0 }
  0xeb PF: > { %s13_s14 = sadd.s32 1, %s463_s14   ;;  %s533_s12 = smov %s459_s13 }
  0xec   : > { %p10_p5 = scmp.ge.s32.totalorder %s13_s14, 4   ;;  %s534_s13 = smov %s536_s15 }
  0xee   :  { %12 = sbr.rel (!%p10_p5) target bundleno = 2 (0x2), region = 68 }

// kernel: bert_attention_forward.5
= control target key start
LH: loop header
LB: loop body
LE: loop exit
PB: predicated region body
PF: predicated region fallthrough
CT: control target
= control target key end

     0   :  { %s517_s12 = smov 0   ;;  %s519_s13 = smov 0   ;;  %s562_s0 = inlined_call_operand.vmem [shape: f32[32,48], index: 0, kind: input, shape index: {}]   ;;  %s563_s1 = inlined_call_operand.vmem [shape: bf16[48,64], index: 1, kind: input, shape index: {}]   ;;  %s564_s2 = inlined_call_operand.vmem [shape: f32[1,64], index: 2, kind: input, shape index: {}]   ;;  %s565_s3 = inlined_call_operand.vmem [shape: f32[32,64], index: 3, kind: output, shape index: {}]  }
   0x1   :  { %s521_s14 = smov 0  }
   0x2 LB: > { %s22_s15 = sadd.s32 1, %s489_s13  ;;  %p416_p0 = scmp.ge.s32.totalorder %s493_s14, 1  ;;  %s493_s14 = sphi %s521_s14, %s13_s14   ;;  %s489_s13 = sphi %s519_s13, %s567_s13   ;;  %s485_s12 = sphi %s517_s12, %s566_s12  }
   0x3   : > { %p23_p1 = scmp.ge.s32.totalorder %s22_s15, 2  ;;  %p169_p2 = scmp.lt.s32.totalorder %s493_s14, 3 }
   0x5   : > { %s569_s15 = smov (%p23_p1, %s22_s15), 0  ;;  %p170_p3 = pnand %p416_p0, %p169_p2 }
   0x6   : > { %v468_v0 = vld [vmem:[%s563_s1] sm:$0xff] (!%p170_p3)   ;;  %v495_v1 = vmov (!%p170_p3), 0.0   ;;  %v469_v2 = vld [vmem:[%s563_s1 + $0x8] sm:$0xff] (!%p170_p3)   ;;  %vm496_vm0 = vmmov (!%p170_p3), 0   ;;  %s417_s20 = sshll.u32 (!%p170_p3), %s485_s12, 1  ;;  %v470_v3 = vld [vmem:[%s563_s1 + $0x10] sm:$0xff] (!%p170_p3)  }
   0x7   : > { %173 = sbr.rel (%p170_p3) target bundleno = 237 (0xed), region = 32  ;;  %432 = vmatprep.subr.bf16.mxu0 (!%p170_p3), %v495_v1  ;;  %438 = vmatprep.mubr.msk.bf16.mxu0 (!%p170_p3), %vm496_vm0, %v495_v1  ;;  %p204_p4 = scmp.lt.s32.totalorder (!%p170_p3), %s417_s20, 3  ;;  %vm260_vm1 = vcmask (!%p170_p3), 392192   ;;  %v421_v7 = vld [vmem:[%s564_s2] ss:$0 sm:$0xff] (!%p170_p3)  ;;  %vm305_vm2 = vcmask (!%p170_p3), 523264  }
   0x8   : > { %433 = vmatpush3.bf16.msra.mxu0 (!%p170_p3), %v468_v0 }
   0x9   : > { %434 = vmatprep.subr.bf16.mxu0 (!%p170_p3), %v495_v1 }
   0xc   : > { %435 = vmatpush3.bf16.msra.mxu0 (!%p170_p3), %v469_v2 }
   0xd   : > { %436 = vmatprep.subr.bf16.mxu0 (!%p170_p3), %v495_v1 }
   0xe   : > { %s571_s20 = smov (!%p204_p4, %s417_s20), 3 }
   0xf   : > { %s418_s23 = sshll.u32 %s571_s20, 3 }
  0x10   : > { %s207_s26 = scalar_lea.vmem %s562_s0, %s418_s23  ;;  %437 = vmatpush3.bf16.msra.mxu0 %v470_v3  ;;  %s223_s4 = scalar_lea.vmem %s565_s3, %s418_s23 }
  0x11   : > { %v226_v4 = vld [vmem:[%s207_s26] sm:$0xff]  ;;  %v227_v5 = vld [vmem:[%s207_s26 + $0x8] sm:$0xff] }
  0x12   : > { %v228_v6 = vpack.c.bf16 %v227_v5, %v226_v4 }
  0x14   : > { %439 = vmatmul.mubr.msk.bf16.vlgmr.msra.gmra.mrb[0].mxu0 %vm260_vm1, %v228_v6 }
  0xe7   : > { %v298_v8 = vpop.f32.mrb[0].mxu0 }
  0xe8   : > { %v299_v9 = vadd.f32 %v421_v7, %v298_v8  ;;  %v440_v10 = vpop.f32.mrb[1].mxu0 }
  0xe9   : > { %v301_v11 = vpop.f32.mrb[2].mxu0 }
  0xea   : > { %306 = vst.msk [vmem:[%s223_s4] sm:$0xff] %vm305_vm2, %v299_v9  ;;  %v302_v12 = vadd.f32 %v421_v7, %v301_v11  ;;  %v441_v13 = vpop.f32.mrb[3].mxu0 }
  0xec   : > { %307 = vst.msk [vmem:[%s223_s4 + $0x8] sm:$0xff] %vm305_vm2, %v302_v12 }
  0xed PF: > { %s13_s14 = sadd.s32 1, %s493_s14   ;;  %s566_s12 = smov %s489_s13 }
  0xee   : > { %p10_p5 = scmp.ge.s32.totalorder %s13_s14, 4   ;;  %s567_s13 = smov %s569_s15 }
  0xf0   :  { %12 = sbr.rel (!%p10_p5) target bundleno = 2 (0x2), region = 68 }

// kernel: bert_attention_forward.7
= control target key start
LH: loop header
LB: loop body
LE: loop exit
PB: predicated region body
PF: predicated region fallthrough
CT: control target
= control target key end

     0   :  { %11 = vsyncpa [#allocation3], 0  ;;  %s749_s0 = inlined_call_operand.vmem [shape: f32[16,32], index: 0, kind: input, shape index: {}]   ;;  %s750_s1 = inlined_call_operand.vmem [shape: bf16[32,32], index: 1, kind: input, shape index: {}]   ;;  %s751_s2 = inlined_call_operand.vmem [shape: f32[1,32], index: 2, kind: input, shape index: {}]   ;;  %s752_s3 = inlined_call_operand.vmem [shape: f32[16,32], index: 3, kind: input, shape index: {}]   ;;  %s753_s4 = inlined_call_operand.vmem [shape: f32[1,32], index: 4, kind: input, shape index: {}]   ;;  %s754_s5 = inlined_call_operand.vmem [shape: f32[1,32], index: 5, kind: input, shape index: {}]   ;;  %s755_s6 = inlined_call_operand.hbm [shape: f32[16,32], index: 6, kind: output, shape index: {}]  }
   0x1   :  { %13 = vsyncpa [#allocation3 + $0x1], 0  ;;  %s627_s21 = smov 0   ;;  %s629_s22 = smov 0  }
   0x2   :  { %s631_s23 = smov 0   ;;  %s633_s24 = smov 0  }
   0x3 LB: > { %s648_s25 = sadd.s32 4294967295, %s587_s24   ;;  %s452_s26 = sadd.s32 4294967294, %s587_s24   ;;  %s587_s24 = sphi %s633_s24, %s761_s24   ;;  %s583_s23 = sphi %s631_s23, %s760_s23   ;;  %s579_s22 = sphi %s629_s22, %s759_s22   ;;  %s575_s21 = sphi %s627_s21, %s758_s21  }
   0x4   : > { %s652_s27 = sadd.s32 1, %s587_s24   ;;  %s162_s28 = sadd.s32 1, %s583_s23 }
   0x5   : > { %s159_s29 = ssub.s32 %s587_s24, %s652_s27  ;;  %p172_p0 = scmp.ne.s32.totalorder %s583_s23, %s579_s22 }
   0x6   : > { %p160_p1 = scmp.eq.s32.totalorder %s159_s29, 0  ;;  %p173_p2 = scmp.eq.s32.totalorder %s648_s25, 1 }
   0x7   : > { %p178_p3 = scmp.ne.s32.totalorder %s579_s22, %s575_s21  ;;  %p179_p4 = scmp.eq.s32.totalorder %s452_s26, 1 }
   0x8   : > { %s663_s30 = scalar_select %p160_p1, %s583_s23, %s162_s28  }
   0x9   : > { %p665_p5 = por %p173_p2, %p172_p0  ;;  %p669_p6 = por %p179_p4, %p178_p3 }
   0xa   : > { %p455_p7 = scmp.ge.s32.totalorder %s587_s24, 1  ;;  %p223_p8 = scmp.lt.s32.totalorder %s587_s24, 3 }
   0xc   : > { %p224_p9 = pnand %p455_p7, %p223_p8 }
   0xd   : > { %v521_v0 = vld [vmem:[%s750_s1] sm:$0xff] (!%p224_p9)   ;;  %v589_v1 = vmov (!%p224_p9), 0.0   ;;  %v522_v2 = vld [vmem:[%s750_s1 + $0x8] sm:$0xff] (!%p224_p9)   ;;  %vm590_vm0 = vmmov (!%p224_p9), 0   ;;  %p256_p10 = scmp.lt.s32.totalorder (!%p224_p9), %s648_s25, 1  ;;  %vm290_vm1 = vcmask (!%p224_p9), 261120  }
   0xe   : > { %227 = sbr.rel (%p224_p9) target bundleno = 571 (0x23b), region = 44  ;;  %472 = vmatprep.subr.bf16.mxu0 (!%p224_p9), %v589_v1  ;;  %476 = vmatprep.mubr.msk.bf16.mxu0 (!%p224_p9), %vm590_vm0, %v589_v1  ;;  %v459_v5 = vld [vmem:[%s751_s2] ss:$0 sm:$0xff] (!%p224_p9)  ;;  %s253_s29 = sand.u32 (!%p224_p9), 1, %s579_s22  }
   0xf   : > { %473 = vmatpush3.bf16.msra.mxu0 (!%p224_p9), %v521_v0  ;;  %s456_s9 = sshll.u32 (!%p224_p9), %s253_s29, 3  ;;  %v463_v23 = vld [vmem:[%s753_s4] ss:$0 sm:$0xff] (!%p224_p9) }
  0x10   : > { %474 = vmatprep.subr.bf16.mxu0 (!%p224_p9), %v589_v1  ;;  %v464_v25 = vld [vmem:[%s754_s5] ss:$0 sm:$0xff] (!%p224_p9)  ;;  %s255_s15 = scalar_lea.vmem (!%p224_p9), [#allocation2], %s456_s9 }
  0x11   : > { %s381_s16 = sshll.u32 (!%p224_p9), %s255_s15, 4  ;;  %s708_s16 = int_to_ptr.vmem [resolvable:$true] %s381_s16 }
  0x12   : > { %s525_s26 = scalar_lea.vmem (!%p224_p9), %s708_s16, 128 }
  0x13   : > { %475 = vmatpush3.bf16.msra.mxu0 (!%p224_p9), %v522_v2  ;;  %p526_p11 = scmp.ne.s32.totalorder (!%p224_p9), %s708_s16, %s525_s26 }
  0x15   : > { %s257_s13 = scalar_select %p256_p10, %s648_s25, 1 }
  0x16   : > { %p527_p12 = pnand %p526_p11, %p665_p5 }
  0x17   : > { %s457_s14 = sshll.u32 %s257_s13, 3 }
  0x18   : > { %s259_s17 = scalar_lea.vmem %s749_s0, %s457_s14  ;;  %s263_s20 = scalar_lea.vmem %s752_s3, %s457_s14 }
  0x19   : > { %v265_v3 = vld [vmem:[%s259_s17] sm:$0xff]  ;;  %s466_s14 = sshll.u32 %s648_s25, 7  ;;  %p528_p13 = pneg %p527_p12 }
  0x1a   : > { %v266_v4 = vpack.c.bf16 %v265_v3, %v265_v3  ;;  %v334_v7 = vld [vmem:[%s263_s20] sm:$0xff]  ;;  %s706_s19 = scalar_lea.hbm %s755_s6, %s466_s14  ;;  %s368_s20 = scalar_lea.sflag [#allocation3], %s253_s29 }
  0x1b   : > { %s591_s25 = smov [#allocation2]  }
  0x1c   : > { %477 = vmatmul.mubr.msk.bf16.vlgmr.msra.gmra.mrb[0].mxu0 %vm290_vm1, %v266_v4  ;;  %s529_s28 = sshll.u32 %s591_s25, 4  ;;  %s530_s28 = int_to_ptr.vmem [resolvable:$false] %s529_s28 }
  0x1d   : > { %s531_s9 = scalar_lea.vmem %s530_s28, 256  ;;  %p532_p0 = scmp.lt.s32.totalorder %s708_s16, %s530_s28 }
  0x1e   : > { %p533_p1 = scmp.lt.s32.totalorder %s531_s9, %s525_s26 }
  0x20   : > { %p534_p2 = por %p533_p1, %p532_p0 }
  0x22   : > { %p535_p3 = pnand %p534_p2, %p528_p13 }
  0xef   : > { %v328_v6 = vpop.f32.mrb[0].mxu0 }
  0xf0   : > { %v329_v8 = vadd.f32 %v459_v5, %v328_v6  ;;  %v478_v9 = vpop.f32.mrb[1].mxu0 }
  0xf1   : > { %v331_v10 = vpop.f32.mrb[2].mxu0 }
  0xf2   : > { %v479_v11 = vpop.f32.mrb[3].mxu0  ;;  %v335_v12 = vadd.f32 %v334_v7, %v329_v8 }
  0xf4   : > { %v336_v13 = vsel %vm290_vm1, %v335_v12, 0.0 }
  0xf5   : > { %337 = vadd.xlane.f32.xlu0 %v336_v13 }
 0x182   : > { %v338_v14 = vpop.xlane.xlu0 %337 }
 0x183   : > { %v340_v15 = vmul.f32 0.03125, %v338_v14 }
 0x185   : > { %v341_v16 = vsub.f32 %v335_v12, %v340_v15 }
 0x187   : > { %v342_v17 = vmul.f32 %v341_v16, %v341_v16 }
 0x189   : > { %v343_v18 = vsel %vm290_vm1, %v342_v17, 0.0 }
 0x18a   : > { %344 = vadd.xlane.f32.xlu0 %v343_v18 }
 0x217   : > { %v345_v19 = vpop.xlane.xlu0 %344 }
 0x218   : > { %v346_v20 = vmul.f32 0.03125, %v345_v19 }
 0x21a   : > { %v347_v21 = vadd.f32 1e-12, %v346_v20 }
 0x21c   : > { %523 = vrsqrt.f32 %v347_v21 }
 0x226   : > { %v524_v22 = vpop.eup %523 }
 0x227   : > { %v349_v24 = vmul.f32 %v524_v22, %v341_v16 }
 0x229   : > { %v357_v26 = vmul.f32 %v463_v23, %v349_v24 }
 0x22b   : > { %v365_v27 = vadd.f32 %v464_v25, %v357_v26 }
 0x22d   : > { %366 = vst.msk [vmem:[%s255_s15] sm:$0xff] %vm290_vm1, %v365_v27 }
 0x22e   : > { %538 = shalt.err (!%p535_p3)
}
 0x22f   : > { %s539_s29 = scalar_lea.hbm %s706_s19, 128  ;;  %s543_s12 = scalar_lea.hbm %s755_s6, 256 }
 0x230   : > { %p540_p4 = scmp.ne.s32.totalorder %s706_s19, %s539_s29  ;;  %p544_p9 = scmp.lt.u32.totalorder %s706_s19, %s755_s6 }
 0x231   : > { %p545_p10 = scmp.lt.u32.totalorder %s543_s12, %s539_s29  ;;  %p547_p12 = scmp.lt.u32.totalorder %s539_s29, %s706_s19 }
 0x232   : > { %p541_p7 = pnand %p540_p4, %p665_p5 }
 0x233   : > { %p546_p11 = por %p545_p10, %p544_p9 }
 0x234   : > { %p542_p8 = pneg %p541_p7 }
 0x235   : > { %p548_p13 = por %p547_p12, %p546_p11 }
 0x237   : > { %p549_p0 = pnand %p548_p13, %p542_p8 }
 0x239   : > { %552 = shalt.err (!%p549_p0)
}
 0x23a   : > { %480 = dma.vmem_to_hbm [thread:$0]  (%p665_p5), %s708_s16, 128, %s706_s19, %s368_s20  }
 0x23b PF: > { %p486_p1 = scmp.ge.s32.totalorder %s587_s24, 2  ;;  %s393_s15 = sand.u32 1, %s575_s21  }
 0x23c   : > { %s394_s17 = scalar_lea.sflag [#allocation3], %s393_s15 }
 0x23d   : > { %p483_p2 = pnand %p486_p1, %p669_p6 }
 0x23f   : > { %570 = dma.done.wait (!%p483_p2), %s394_s17, 128  }
 0x240   : > { %572 = vsyncadd (!%p483_p2), %s394_s17, 4294967168  ;;  %p16_p3 = scmp.ge.s32.totalorder %s652_s27, 4   ;;  %s758_s21 = smov %s579_s22 }
 0x241   : > { %s759_s22 = smov %s583_s23  ;;  %s760_s23 = smov %s663_s30 }
 0x242   : > { %s761_s24 = smov %s652_s27  ;;  %18 = sbr.rel (!%p16_p3) target bundleno = 3 (0x3), region = 82 }
 0x249   :  { %399 = vsyncpa [#allocation3], 1 }
 0x24a   :  { %401 = vsyncpa [#allocation3 + $0x1], 1 }

// kernel: bert_attention_forward.6
= control target key start
LH: loop header
LB: loop body
LE: loop exit
PB: predicated region body
PF: predicated region fallthrough
CT: control target
= control target key end

     0   :  { %s1798_s21 = smov 0   ;;  %s1800_s22 = smov 0   ;;  %s2194_s0 = inlined_call_operand.vmem [shape: f32[2,8,32], index: 0, kind: input, shape index: {}]   ;;  %s2195_s1 = inlined_call_operand.vmem [shape: f32[2,16,64], index: 1, kind: input, shape index: {}]   ;;  %s2196_s2 = inlined_call_operand.vmem [shape: f32[8,4], index: 2, kind: input, shape index: {}]   ;;  %s2197_s3 = inlined_call_operand.vmem [shape: f32[8,4], index: 3, kind: input, shape index: {}]   ;;  %s2198_s4 = inlined_call_operand.vmem [shape: f32[16,4], index: 4, kind: input, shape index: {}]   ;;  %s2199_s5 = inlined_call_operand.vmem [shape: f32[16,4], index: 5, kind: input, shape index: {}]   ;;  %s2200_s6 = inlined_call_operand.vmem [shape: f32[2,8,32], index: 6, kind: output, shape index: {}]  }
   0x1   :  { %s1802_s23 = smov 0  }
   0x2 LB: > { %s35_s24 = sadd.s32 1, %s1735_s22  ;;  %p1529_p0 = scmp.ge.s32.totalorder %s1739_s23, 1  ;;  %s1739_s23 = sphi %s1802_s23, %s16_s23   ;;  %s1735_s22 = sphi %s1800_s22, %s2202_s22   ;;  %s1731_s21 = sphi %s1798_s21, %s2201_s21  }
   0x3   : > { %p37_p1 = scmp.ge.s32.totalorder %s35_s24, 2  ;;  %p294_p2 = scmp.lt.s32.totalorder %s1739_s23, 3 }
   0x5   : > { %s2204_s24 = smov (%p37_p1, %s35_s24), 0  ;;  %p295_p3 = pnand %p1529_p0, %p294_p2 }
   0x6   : > { %v1821_v0 = vld [vmem:[%s2198_s4 + $0x8] sm:$0xff] (!%p295_p3)  ;;  %v1826_v1 = vld [vmem:[%s2196_s2] sm:$0xff] (!%p295_p3)  ;;  %s1741_s29 = smov (!%p295_p3), 4   ;;  %s1742_s8 = smov (!%p295_p3), 12   ;;  %vm523_vm0 = vcmask (!%p295_p3), 31744   ;;  %v1749_v59 = vmov (!%p295_p3), -inf  }
   0x7   : > { %298 = sbr.rel (%p295_p3) target bundleno = 1776 (0x6f0), region = 44  ;;  %579 = vrot.lane.b32.xlu1 (!%p295_p3), %v1821_v0, %s1741_s29  ;;  %420 = vrot.lane.b32.xlu0 (!%p295_p3), %v1826_v1, %s1741_s29  ;;  %v1835_v2 = vld [vmem:[%s2198_s4] sm:$0xff] (!%p295_p3)  ;;  %s1743_s9 = smov (!%p295_p3), 20   ;;  %v1865_v5 = vld [vmem:[%s2199_s5 + $0x8] sm:$0xff] (!%p295_p3)  ;;  %540 = vst.msk [vmem:[#allocation3] sm:$0xff] (!%p295_p3), %vm523_vm0, %v1749_v59  ;;  %v1750_v60 = vmov (!%p295_p3), 0.0  }
   0x8   : > { %s1744_s10 = smov (!%p295_p3), 28   ;;  %v1851_v3 = vld [vmem:[%s2199_s5] sm:$0xff] (!%p295_p3)  ;;  %s1745_s17 = smov (!%p295_p3), 8   ;;  %541 = vst.msk [vmem:[#allocation4] sm:$0xff] (!%p295_p3), %vm523_vm0, %v1750_v60  ;;  %1562 = vmatprep.subr.bf16.mxu0 (!%p295_p3), %v1750_v60  ;;  %1568 = vmatprep.subr.bf16.mxu1 (!%p295_p3), %v1750_v60  ;;  %vm1751_vm1 = vmmov (!%p295_p3), 0   ;;  %vm525_vm2 = vcmask (!%p295_p3), 64512  }
   0x9   : > { %v1856_v4 = vld [vmem:[%s2197_s3] sm:$0xff] (!%p295_p3)  ;;  %s1746_s18 = smov (!%p295_p3), 16   ;;  %s1747_s19 = smov (!%p295_p3), 24   ;;  %1564 = vmatprep.mubr.msk.bf16.mxu0 (!%p295_p3), %vm1751_vm1, %v1750_v60  ;;  %1570 = vmatprep.mubr.msk.bf16.mxu1 (!%p295_p3), %vm1751_vm1, %v1750_v60  ;;  %vm527_vm3 = vcmask (!%p295_p3), 97280   ;;  %vm529_vm4 = vcmask (!%p295_p3), 130048   ;;  %vm531_vm5 = vcmask (!%p295_p3), 162816  }
   0xa   : > { %p355_p4 = scmp.lt.s32.totalorder (!%p295_p3), %s1731_s21, 1  ;;  %vm533_vm6 = vcmask (!%p295_p3), 195584   ;;  %vm535_vm7 = vcmask (!%p295_p3), 228352   ;;  %vm538_vm8 = vcmask (!%p295_p3), 257024   ;;  %s1755_s11 = smov (!%p295_p3), 112   ;;  %vm1318_vm9 = vcmask (!%p295_p3), 7168  }
   0xb   : > { %446 = vrot.lane.b32.xlu1 (!%p295_p3), %v1826_v1, %s1742_s8  ;;  %577 = vrot.lane.b32.xlu0 (!%p295_p3), %v1835_v2, %s1741_s29  ;;  %s1756_s12 = smov (!%p295_p3), 104   ;;  %vm1320_vm10 = vcmask (!%p295_p3), 15360   ;;  %s1760_s13 = smov (!%p295_p3), 88   ;;  %vm1322_vm11 = vcmask (!%p295_p3), 23552   ;;  %vm542_vm12 = vcmask (!%p295_p3), 261120  }
   0xc   : > { %s1761_s14 = smov (!%p295_p3), 80   ;;  %543 = vst.msk [vmem:[#allocation5] sm:$0xff] (!%p295_p3), %vm542_vm12, %v1750_v60  ;;  %s1762_s15 = smov (!%p295_p3), 72  }
   0xe   : > { %s2206_s21 = smov (!%p355_p4, %s1731_s21), 1 }
   0xf   : > { %631 = vrot.lane.b32.xlu1 %v1821_v0, %s1742_s8  ;;  %629 = vrot.lane.b32.xlu0 %v1835_v2, %s1742_s8  ;;  %s1545_s20 = sshll.u32 %s2206_s21, 4  ;;  %s1530_s25 = sshll.u32 %s2206_s21, 3 }
  0x10   : > { %s370_s28 = scalar_lea.vmem %s2195_s1, %s1545_s20 }
  0x11   : > { %v1910_v6 = vld [vmem:[%s370_s28 + $0x8] sm:$0xff]  ;;  %v1916_v12 = vld [vmem:[%s370_s28] sm:$0xff] }
  0x13   : > { %472 = vrot.lane.b32.xlu0 %v1826_v1, %s1743_s9  ;;  %681 = vrot.lane.b32.xlu1 %v1835_v2, %s1743_s9 }
  0x17   : > { %683 = vrot.lane.b32.xlu0 %v1821_v0, %s1743_s9  ;;  %498 = vrot.lane.b32.xlu1 %v1826_v1, %s1744_s10 }
  0x1b   : > { %733 = vrot.lane.b32.xlu0 %v1835_v2, %s1744_s10  ;;  %735 = vrot.lane.b32.xlu1 %v1821_v0, %s1744_s10 }
  0x1f   : > { %555 = vrot.lane.b32.xlu1 %v1851_v3, %s1741_s29  ;;  %409 = vrot.lane.b32.xlu0 %v1856_v4, %s1741_s29 }
  0x23   : > { %433 = vrot.lane.b32.xlu1 %v1856_v4, %s1742_s8  ;;  %557 = vrot.lane.b32.xlu0 %v1865_v5, %s1741_s29 }
  0x27   : > { %605 = vrot.lane.b32.xlu1 %v1865_v5, %s1742_s8  ;;  %603 = vrot.lane.b32.xlu0 %v1851_v3, %s1742_s8  ;;  %s361_s8 = scalar_lea.vmem %s2194_s0, %s1530_s25 }
  0x28   : > { %v1912_v7 = vld [vmem:[%s361_s8] sm:$0xff] }
  0x2b   : > { %442 = vrot.lane.b32.xlu1 %v1856_v4, %s1745_s17  ;;  %621 = vrot.lane.b32.xlu0 %v1851_v3, %s1745_s17 }
  0x2f   : > { %623 = vrot.lane.b32.xlu1 %v1865_v5, %s1745_s17  ;;  %459 = vrot.lane.b32.xlu0 %v1856_v4, %s1743_s9 }
  0x33   : > { %655 = vrot.lane.b32.xlu1 %v1851_v3, %s1743_s9  ;;  %657 = vrot.lane.b32.xlu0 %v1865_v5, %s1743_s9  ;;  %s1748_s9 = smov 124  }
  0x37   : > { %673 = vrot.lane.b32.xlu1 %v1851_v3, %s1746_s18  ;;  %468 = vrot.lane.b32.xlu0 %v1856_v4, %s1746_s18 }
  0x3b   : > { %485 = vrot.lane.b32.xlu1 %v1856_v4, %s1744_s10  ;;  %675 = vrot.lane.b32.xlu0 %v1865_v5, %s1746_s18 }
  0x3f   : > { %709 = vrot.lane.b32.xlu1 %v1865_v5, %s1744_s10  ;;  %707 = vrot.lane.b32.xlu0 %v1851_v3, %s1744_s10  ;;  %s1754_s10 = smov 120  }
  0x43   : > { %494 = vrot.lane.b32.xlu1 %v1856_v4, %s1747_s19  ;;  %725 = vrot.lane.b32.xlu0 %v1851_v3, %s1747_s19 }
  0x47   : > { %727 = vrot.lane.b32.xlu1 %v1865_v5, %s1747_s19 }
  0x79   : > { %v580_v8 = vpop.permute.xlu1 %579  ;;  %v421_v9 = vpop.permute.xlu0 %420 }
  0x7a   : > { %v584_v10 = vmul.f32 %v580_v8, %v1910_v6  ;;  %v423_v11 = vmul.f32 %v421_v9, %v1912_v7 }
  0x7c   : > { %589 = vrot.lane.b32.xlu1 %v584_v10, %s1748_s9  ;;  %425 = vrot.lane.b32.xlu0 %v423_v11, %s1748_s9 }
  0x7d   : > { %v447_v13 = vpop.permute.xlu1 %446  ;;  %v578_v14 = vpop.permute.xlu0 %577 }
  0x7e   : > { %v449_v15 = vmul.f32 %v447_v13, %v1912_v7  ;;  %v583_v16 = vmul.f32 %v578_v14, %v1916_v12 }
  0x80   : > { %451 = vrot.lane.b32.xlu1 %v449_v15, %s1748_s9  ;;  %587 = vrot.lane.b32.xlu0 %v583_v16, %s1748_s9  ;;  %v574_v15 = vmul.f32 %v1865_v5, %v1910_v6  ;;  %v418_v16 = vmul.f32 %v1856_v4, %v1912_v7 }
  0x81   : > { %v632_v17 = vpop.permute.xlu1 %631  ;;  %v630_v18 = vpop.permute.xlu0 %629 }
  0x82   : > { %v636_v19 = vmul.f32 %v632_v17, %v1910_v6  ;;  %v635_v20 = vmul.f32 %v630_v18, %v1916_v12  ;;  %v573_v17 = vmul.f32 %v1851_v3, %v1916_v12 }
  0x84   : > { %639 = vrot.lane.b32.xlu1 %v635_v20, %s1748_s9  ;;  %641 = vrot.lane.b32.xlu0 %v636_v19, %s1748_s9 }
  0x85   : > { %v473_v21 = vpop.permute.xlu0 %472  ;;  %v682_v22 = vpop.permute.xlu1 %681 }
  0x86   : > { %v475_v23 = vmul.f32 %v473_v21, %v1912_v7  ;;  %v687_v24 = vmul.f32 %v682_v22, %v1916_v12 }
  0x88   : > { %477 = vrot.lane.b32.xlu0 %v475_v23, %s1748_s9 }
  0x89   : > { %v684_v25 = vpop.permute.xlu0 %683  ;;  %v499_v26 = vpop.permute.xlu1 %498 }
  0x8a   : > { %v688_v27 = vmul.f32 %v684_v25, %v1910_v6  ;;  %v501_v28 = vmul.f32 %v499_v26, %v1912_v7 }
  0x8c   : > { %693 = vrot.lane.b32.xlu1 %v688_v27, %s1748_s9  ;;  %691 = vrot.lane.b32.xlu0 %v687_v24, %s1748_s9 }
  0x8d   : > { %v734_v29 = vpop.permute.xlu0 %733  ;;  %v736_v30 = vpop.permute.xlu1 %735 }
  0x8e   : > { %v739_v31 = vmul.f32 %v734_v29, %v1916_v12  ;;  %v740_v32 = vmul.f32 %v736_v30, %v1910_v6 }
  0x90   : > { %743 = vrot.lane.b32.xlu1 %v739_v31, %s1748_s9  ;;  %503 = vrot.lane.b32.xlu0 %v501_v28, %s1748_s9 }
  0x91   : > { %v556_v33 = vpop.permute.xlu1 %555  ;;  %v410_v34 = vpop.permute.xlu0 %409 }
  0x92   : > { %v561_v39 = vmul.f32 %v556_v33, %v1916_v12  ;;  %v412_v45 = vmul.f32 %v410_v34, %v1912_v7 }
  0x94   : > { %745 = vrot.lane.b32.xlu0 %v740_v32, %s1748_s9  ;;  %429 = vrot.lane.b32.xlu1 %v1826_v1, %s1745_s17 }
  0x95   : > { %v434_v35 = vpop.permute.xlu1 %433  ;;  %v558_v36 = vpop.permute.xlu0 %557 }
  0x96   : > { %v436_v42 = vmul.f32 %v434_v35, %v1912_v7  ;;  %v562_v48 = vmul.f32 %v558_v36, %v1910_v6 }
  0x98   : > { %595 = vrot.lane.b32.xlu0 %v1835_v2, %s1745_s17  ;;  %597 = vrot.lane.b32.xlu1 %v1821_v0, %s1745_s17 }
  0x99   : > { %v606_v37 = vpop.permute.xlu1 %605  ;;  %v604_v38 = vpop.permute.xlu0 %603 }
  0x9a   : > { %v609_v46 = vmul.f32 %v604_v38, %v1916_v12  ;;  %v610_v52 = vmul.f32 %v606_v37, %v1910_v6 }
  0x9c   : > { %455 = vrot.lane.b32.xlu0 %v1826_v1, %s1746_s18  ;;  %647 = vrot.lane.b32.xlu1 %v1835_v2, %s1746_s18 }
  0x9d   : > { %v443_v40 = vpop.permute.xlu1 %442  ;;  %v622_v41 = vpop.permute.xlu0 %621 }
  0x9e   : > { %v445_v18 = vmul.f32 %v443_v40, %v1912_v7  ;;  %v627_v26 = vmul.f32 %v622_v41, %v1916_v12 }
  0xa0   : > { %649 = vrot.lane.b32.xlu0 %v1821_v0, %s1746_s18  ;;  %565 = vrot.lane.b32.xlu1 %v561_v39, %s1748_s9 }
  0xa1   : > { %v460_v43 = vpop.permute.xlu0 %459  ;;  %v624_v44 = vpop.permute.xlu1 %623 }
  0xa2   : > { %v462_v49 = vmul.f32 %v460_v43, %v1912_v7  ;;  %v628_v25 = vmul.f32 %v624_v44, %v1910_v6 }
  0xa4   : > { %481 = vrot.lane.b32.xlu0 %v1826_v1, %s1747_s19  ;;  %438 = vrot.lane.b32.xlu1 %v436_v42, %s1748_s9 }
  0xa5   : > { %v658_v47 = vpop.permute.xlu0 %657  ;;  %v656_v50 = vpop.permute.xlu1 %655 }
  0xa6   : > { %v661_v53 = vmul.f32 %v656_v50, %v1916_v12  ;;  %v662_v56 = vmul.f32 %v658_v47, %v1910_v6 }
  0xa8   : > { %414 = vrot.lane.b32.xlu0 %v412_v45, %s1748_s9  ;;  %613 = vrot.lane.b32.xlu1 %v609_v46, %s1748_s9 }
  0xa9   : > { %v469_v51 = vpop.permute.xlu0 %468  ;;  %v674_v55 = vpop.permute.xlu1 %673 }
  0xaa   : > { %v679_v32 = vmul.f32 %v674_v55, %v1916_v12  ;;  %v471_v33 = vmul.f32 %v469_v51, %v1912_v7 }
  0xac   : > { %567 = vrot.lane.b32.xlu0 %v562_v48, %s1748_s9  ;;  %464 = vrot.lane.b32.xlu1 %v462_v49, %s1748_s9 }
  0xad   : > { %v676_v54 = vpop.permute.xlu0 %675  ;;  %v486_v61 = vpop.permute.xlu1 %485 }
  0xae   : > { %v488_v62 = vmul.f32 %v486_v61, %v1912_v7  ;;  %v680_v38 = vmul.f32 %v676_v54, %v1910_v6 }
  0xb0   : > { %615 = vrot.lane.b32.xlu0 %v610_v52, %s1748_s9  ;;  %665 = vrot.lane.b32.xlu1 %v661_v53, %s1748_s9 }
  0xb1   : > { %v708_v57 = vpop.permute.xlu0 %707  ;;  %v710_v63 = vpop.permute.xlu1 %709 }
  0xb2   : > { %v713_v58 = vmul.f32 %v708_v57, %v1916_v12  ;;  %v714_v8 = vmul.f32 %v710_v63, %v1910_v6 }
  0xb4   : > { %667 = vrot.lane.b32.xlu0 %v662_v56, %s1748_s9  ;;  %699 = vrot.lane.b32.xlu1 %v1835_v2, %s1747_s19 }
  0xb5   : > { %v495_v9 = vpop.permute.xlu1 %494  ;;  %v726_v11 = vpop.permute.xlu0 %725 }
  0xb6   : > { %v497_v39 = vmul.f32 %v495_v9, %v1912_v7  ;;  %v731_v46 = vmul.f32 %v726_v11, %v1916_v12 }
  0xb8   : > { %701 = vrot.lane.b32.xlu0 %v1821_v0, %s1747_s19  ;;  %717 = vrot.lane.b32.xlu1 %v713_v58, %s1748_s9 }
  0xb9   : > { %v728_v10 = vpop.permute.xlu1 %727 }
  0xba   : > { %v732_v45 = vmul.f32 %v728_v10, %v1910_v6 }
  0xbc   : > { %490 = vrot.lane.b32.xlu0 %v488_v62, %s1748_s9 }
  0xc0   : > { %719 = vrot.lane.b32.xlu0 %v714_v8, %s1748_s9 }
  0xee   : > { %v590_v13 = vpop.permute.xlu1 %589  ;;  %v426_v14 = vpop.permute.xlu0 %425 }
  0xef   : > { %v594_v21 = vadd.f32 %v590_v13, %v574_v15  ;;  %v428_v22 = vadd.f32 %v426_v14, %v418_v16 }
  0xf2   : > { %v452_v19 = vpop.permute.xlu1 %451  ;;  %v588_v20 = vpop.permute.xlu0 %587 }
  0xf3   : > { %v454_v23 = vadd.f32 %v452_v19, %v445_v18  ;;  %v593_v24 = vadd.f32 %v588_v20, %v573_v17  ;;  %v407_v18 = vmul.f32 %v1826_v1, %v1912_v7 }
  0xf5   : > { %v1661_v27 = vpack.i.bf16 %v454_v23, %v594_v21  ;;  %v1656_v5 = vpack.i.bf16 %v593_v24, %v428_v22  ;;  %v551_v24 = vmul.f32 %v1835_v2, %v1916_v12 }
  0xf6   : > { %v640_v28 = vpop.permute.xlu1 %639  ;;  %v642_v29 = vpop.permute.xlu0 %641 }
  0xf7   : > { %v645_v4 = vadd.f32 %v640_v28, %v627_v26  ;;  %v646_v30 = vadd.f32 %v642_v29, %v628_v25  ;;  %1657 = vrot.lane.b32.xlu1 %v1656_v5, %s1741_s29  ;;  %1662 = vrot.lane.b32.xlu0 %v1661_v27, %s1741_s29  ;;  %v552_v26 = vmul.f32 %v1821_v0, %v1910_v6 }
  0xf9   : > { %v1666_v3 = vpack.i.bf16 %v646_v30, %v645_v4 }
  0xfa   : > { %v478_v31 = vpop.permute.xlu0 %477 }
  0xfb   : > { %1667 = vrot.lane.b32.xlu1 %v1666_v3, %s1741_s29  ;;  %v480_v36 = vadd.f32 %v478_v31, %v471_v33 }
  0xfe   : > { %v694_v34 = vpop.permute.xlu1 %693  ;;  %v692_v35 = vpop.permute.xlu0 %691 }
  0xff   : > { %v697_v37 = vadd.f32 %v692_v35, %v679_v32  ;;  %v698_v42 = vadd.f32 %v694_v34, %v680_v38 }
 0x101   : > { %v1671_v40 = vpack.i.bf16 %v697_v37, %v480_v36 }
 0x102   : > { %v504_v41 = vpop.permute.xlu0 %503  ;;  %v744_v44 = vpop.permute.xlu1 %743 }
 0x103   : > { %v506_v43 = vadd.f32 %v504_v41, %v497_v39  ;;  %1672 = vrot.lane.b32.xlu1 %v1671_v40, %s1741_s29  ;;  %v749_v49 = vadd.f32 %v744_v44, %v731_v46 }
 0x105   : > { %v1676_v47 = vpack.i.bf16 %v506_v43, %v698_v42 }
 0x106   : > { %v746_v48 = vpop.permute.xlu0 %745  ;;  %v430_v52 = vpop.permute.xlu1 %429 }
 0x107   : > { %v750_v50 = vadd.f32 %v746_v48, %v732_v45  ;;  %1677 = vrot.lane.b32.xlu0 %v1676_v47, %s1741_s29  ;;  %v432_v22 = vmul.f32 %v430_v52, %v1912_v7 }
 0x109   : > { %v1681_v51 = vpack.i.bf16 %v750_v50, %v749_v49 }
 0x10a   : > { %v596_v53 = vpop.permute.xlu0 %595  ;;  %v598_v54 = vpop.permute.xlu1 %597 }
 0x10b   : > { %1682 = vrot.lane.b32.xlu1 %v1681_v51, %s1741_s29  ;;  %v601_v1 = vmul.f32 %v596_v53, %v1916_v12  ;;  %v602_v30 = vmul.f32 %v598_v54, %v1910_v6  ;;  %s1753_s29 = smov 96  }
 0x10e   : > { %v456_v55 = vpop.permute.xlu0 %455  ;;  %v648_v56 = vpop.permute.xlu1 %647 }
 0x10f   : > { %v458_v4 = vmul.f32 %v456_v55, %v1912_v7  ;;  %v653_v34 = vmul.f32 %v648_v56, %v1916_v12 }
 0x112   : > { %v650_v57 = vpop.permute.xlu0 %649  ;;  %v566_v58 = vpop.permute.xlu1 %565 }
 0x113   : > { %v571_v3 = vsub.f32 %v551_v24, %v566_v58  ;;  %v654_v0 = vmul.f32 %v650_v57, %v1910_v6 }
 0x116   : > { %v482_v59 = vpop.permute.xlu0 %481  ;;  %v439_v61 = vpop.permute.xlu1 %438 }
 0x117   : > { %v441_v5 = vsub.f32 %v432_v22, %v439_v61  ;;  %v484_v40 = vmul.f32 %v482_v59, %v1912_v7 }
 0x11a   : > { %v415_v62 = vpop.permute.xlu0 %414  ;;  %v614_v63 = vpop.permute.xlu1 %613 }
 0x11b   : > { %v417_v23 = vsub.f32 %v407_v18, %v415_v62  ;;  %v619_v41 = vsub.f32 %v601_v1, %v614_v63  ;;  %v1752_v1 = vmov 0  }
 0x11c   : > { %1686 = vset.pattern.permute.xlu1 %v1752_v1 }
 0x11e   : > { %v568_v8 = vpop.permute.xlu0 %567  ;;  %v465_v9 = vpop.permute.xlu1 %464 }
 0x11f   : > { %v572_v32 = vsub.f32 %v552_v26, %v568_v8  ;;  %v467_v43 = vsub.f32 %v458_v4, %v465_v9 }
 0x122   : > { %v616_v10 = vpop.permute.xlu0 %615  ;;  %v2012_v11 = vpop.permute.xlu1 %665 }
 0x123   : > { %v620_v42 = vsub.f32 %v602_v30, %v616_v10  ;;  %v671_v46 = vsub.f32 %v653_v34, %v2012_v11 }
 0x126   : > { %v2014_v13 = vpop.permute.xlu0 %667  ;;  %v700_v15 = vpop.permute.xlu1 %699 }
 0x127   : > { %v672_v53 = vsub.f32 %v654_v0, %v2014_v13  ;;  %v705_v55 = vmul.f32 %v700_v15, %v1916_v12 }
 0x12a   : > { %v702_v14 = vpop.permute.xlu0 %701  ;;  %v2016_v17 = vpop.permute.xlu1 %717 }
 0x12b   : > { %v706_v54 = vmul.f32 %v702_v14, %v1910_v6  ;;  %v723_v11 = vsub.f32 %v705_v55, %v2016_v17 }
 0x12e   : > { %v491_v16 = vpop.permute.xlu0 %490 }
 0x12f   : > { %v493_v56 = vsub.f32 %v484_v40, %v491_v16 }
 0x132   : > { %v2020_v19 = vpop.permute.xlu0 %719 }
 0x133   : > { %v724_v13 = vsub.f32 %v706_v54, %v2020_v19 }
 0x169   : > { %v1658_v20 = vpop.permute.xlu1 %1657  ;;  %v1663_v25 = vpop.permute.xlu0 %1662 }
 0x16a   : > { %v1659_v21 = vunpack.i.l.bf16 %v1658_v20  ;;  %v1660_v28 = vunpack.i.h.bf16 %v1658_v20  ;;  %v1664_v29 = vunpack.i.l.bf16 %v1663_v25  ;;  %v1665_v33 = vunpack.i.h.bf16 %v1663_v25 }
 0x16c   : > { %v524_v27 = vsel %vm523_vm0, %v417_v23, %v1659_v21  ;;  %v784_v35 = vsel %vm523_vm0, %v571_v3, %v1660_v28  ;;  %v785_v37 = vsel %vm523_vm0, %v572_v32, %v1664_v29  ;;  %v2067_v29 = vld [vmem:[#allocation3] sm:$0xff]  ;;  %v2075_v3 = vpack.c.bf16 %v1910_v6, %v1916_v12 }
 0x16d   : > { %v526_v2 = vsel %vm525_vm2, %v524_v27, %v441_v5  ;;  %v1668_v31 = vpop.permute.xlu1 %1667  ;;  %v787_v47 = vsel %vm525_vm2, %v784_v35, %v619_v41  ;;  %v788_v48 = vsel %vm525_vm2, %v785_v37, %v620_v42 }
 0x16e   : > { %v528_v36 = vsel %vm527_vm3, %v526_v2, %v1665_v33  ;;  %v1670_v38 = vunpack.i.h.bf16 %v1668_v31  ;;  %v1669_v39 = vunpack.i.l.bf16 %v1668_v31 }
 0x16f   : > { %v530_v49 = vsel %vm529_vm4, %v528_v36, %v467_v43 }
 0x170   : > { %v790_v50 = vsel %vm527_vm3, %v787_v47, %v1669_v39  ;;  %v791_v51 = vsel %vm527_vm3, %v788_v48, %v1670_v38 }
 0x171   : > { %v793_v61 = vsel %vm529_vm4, %v790_v50, %v671_v46  ;;  %v794_v63 = vsel %vm529_vm4, %v791_v51, %v672_v53 }
 0x175   : > { %v1673_v44 = vpop.permute.xlu1 %1672 }
 0x176   : > { %v1674_v45 = vunpack.i.l.bf16 %v1673_v44  ;;  %v1675_v7 = vunpack.i.h.bf16 %v1673_v44 }
 0x178   : > { %v532_v52 = vsel %vm531_vm5, %v530_v49, %v1674_v45  ;;  %v796_v8 = vsel %vm531_vm5, %v793_v61, %v1675_v7 }
 0x179   : > { %v1678_v57 = vpop.permute.xlu0 %1677  ;;  %v534_v62 = vsel %vm533_vm6, %v532_v52, %v493_v56  ;;  %v799_v20 = vsel %vm533_vm6, %v796_v8, %v723_v11 }
 0x17a   : > { %v1680_v58 = vunpack.i.h.bf16 %v1678_v57  ;;  %v1679_v59 = vunpack.i.l.bf16 %v1678_v57 }
 0x17c   : > { %v536_v9 = vsel %vm535_vm7, %v534_v62, %v1680_v58  ;;  %v797_v10 = vsel %vm531_vm5, %v794_v63, %v1679_v59  ;;  %v1757_v62 = vmov 1   ;;  %v1758_v63 = vmov 2  }
 0x17d   : > { %v537_v14 = vpack.c.bf16 %v536_v9, %v536_v9  ;;  %v1683_v15 = vpop.permute.xlu1 %1682  ;;  %v800_v21 = vsel %vm533_vm6, %v797_v10, %v724_v13  ;;  %1687 = vset.pattern.permute.xlu0 %v1757_v62  ;;  %v1759_v10 = vmov 3  }
 0x17e   : > { %v1685_v16 = vunpack.i.h.bf16 %v1683_v15  ;;  %v1684_v18 = vunpack.i.l.bf16 %v1683_v15 }
 0x17f   : > { %539 = vst.msk [vmem:[#allocation2] sm:$0xf] %vm538_vm8, %v537_v14 }
 0x180   : > { %v802_v22 = vsel %vm535_vm7, %v799_v20, %v1684_v18  ;;  %v803_v23 = vsel %vm535_vm7, %v800_v21, %v1685_v16 }
 0x181   : > { %v804_v24 = vpack.c.bf16 %v803_v23, %v802_v22 }
 0x183   : > { %v813_v25 = vsel %vm525_vm2, %v804_v24, 0 }
 0x184   : > { %1563 = vmatpush3.bf16.xpose.msra.mxu0 %v813_v25 }
 0x185   : > { %1580 = vmatprep.subr.bf16.mxu0 %v1750_v60 }
 0x186   : > { %v805_v17 = vld [vmem:[#allocation2] sm:$0xf] }
 0x187   : > { %v1536_v2 = vcombine.low %v805_v17, %v805_v17 }
 0x18b   : > { %1565 = vmatmul.mubr.msk.bf16.vlgmr.msra.gmra.mrb[0].mxu0 %vm525_vm2, %v805_v17 }
 0x18c   : > { %1582 = vmatprep.mubr.msk.bf16.mxu0 %vm1751_vm1, %v1750_v60 }
 0x25e   : > { %v849_v19 = vpop.f32.mrb[0].mxu0 }
 0x25f   : > { %v1566_v26 = vpop.f32.mrb[1].mxu0  ;;  %v855_v27 = vsel %vm529_vm4, %v849_v19, -inf }
 0x260   : > { %856 = vmax.xlane.f32.xlu0 %v855_v27  ;;  %v852_v5 = vpop.f32.mrb[2].mxu0 }
 0x261   : > { %v1567_v28 = vpop.f32.mrb[3].mxu0 }
 0x2ed   : > { %v857_v4 = vpop.xlane.xlu0 %856 }
 0x2ee   : > { %v2070_v30 = vmax.f32 %v2067_v29, %v857_v4 }
 0x2f0   : > { %864 = vperm.xlu1 %1686, %v2070_v30   ;;  %v859_v11 = vsub.f32 %v2067_v29, %v2070_v30 }
 0x2f2   : > { %v860_v15 = vmul.f32 1.442695, %v859_v11 }
 0x2f4   : > { %877 = vrot.lane.b32.xlu1 %v2075_v3, %s1753_s29 }
 0x2f5   : > { %1688 = vset.pattern.permute.xlu1 %v1758_v63 }
 0x2f8   : > { %936 = vrot.lane.b32.xlu1 %v804_v24, %s1754_s10 }
 0x2fc   : > { %933 = vrot.lane.b32.xlu1 %v1536_v2, %s1754_s10 }
 0x300   : > { %1064 = vrot.lane.b32.xlu1 %v804_v24, %s1755_s11 }
 0x304   : > { %1062 = vrot.lane.b32.xlu1 %v1536_v2, %s1755_s11 }
 0x308   : > { %1192 = vrot.lane.b32.xlu1 %v804_v24, %s1756_s12 }
 0x30c   : > { %1190 = vrot.lane.b32.xlu1 %v1536_v2, %s1756_s12 }
 0x36f   : > { %v865_v31 = vpop.permute.xlu1 %864 }
 0x370   : > { %v867_v32 = vsub.f32 %v849_v19, %v865_v31 }
 0x372   : > { %v868_v33 = vmul.f32 1.442695, %v867_v32 }
 0x373   : > { %v878_v0 = vpop.permute.xlu1 %877 }
 0x374   : > { %1699 = vpow2.f32 %v868_v33  ;;  %1569 = vmatpush3.bf16.msra.mxu1 %v878_v0 }
 0x375   : > { %1574 = vmatprep.subr.bf16.mxu1 %v1750_v60  ;;  %1701 = vpow2.f32 %v860_v15 }
 0x377   : > { %v937_v6 = vpop.permute.xlu1 %936 }
 0x378   : > { %v942_v36 = vsel %vm525_vm2, %v937_v6, 0 }
 0x37b   : > { %v934_v12 = vpop.permute.xlu1 %933 }
 0x37e   : > { %v2079_v34 = vpop.eup %1699 }
 0x37f   : > { %v875_v35 = vpack.c.bf16 %v2079_v34, %v2079_v34  ;;  %v1065_v37 = vpop.permute.xlu1 %1064  ;;  %v2133_v23 = vpop.eup %1701  ;;  %v871_v24 = vsel %vm529_vm4, %v2079_v34, 0.0 }
 0x380   : > { %v1070_v39 = vsel %vm525_vm2, %v1065_v37, 0 }
 0x381   : > { %1571 = vmatmul.mubr.msk.bf16.vlgmr.msra.gmra.mrb[0].mxu1 %vm529_vm4, %v875_v35 }
 0x382   : > { %1575 = vmatpush3.bf16.xpose.msra.mxu1 %v942_v36  ;;  %1576 = vmatprep.mubr.msk.bf16.mxu1 %vm1751_vm1, %v1750_v60 }
 0x383   : > { %1586 = vmatprep.subr.bf16.mxu1 %v1750_v60  ;;  %v1063_v38 = vpop.permute.xlu1 %1062 }
 0x387   : > { %v1193_v40 = vpop.permute.xlu1 %1192 }
 0x388   : > { %v1198_v41 = vsel %vm525_vm2, %v1193_v40, 0 }
 0x389   : > { %1577 = vmatmul.mubr.msk.bf16.vlgmr.msra.gmra.mrb[4].mxu1 %vm525_vm2, %v934_v12 }
 0x38a   : > { %1587 = vmatpush3.bf16.xpose.msra.mxu1 %v1070_v39  ;;  %1588 = vmatprep.mubr.msk.bf16.mxu1 %vm1751_vm1, %v1750_v60 }
 0x38b   : > { %1598 = vmatprep.subr.bf16.mxu1 %v1750_v60  ;;  %v1191_v42 = vpop.permute.xlu1 %1190 }
 0x391   : > { %1589 = vmatmul.mubr.msk.bf16.vlgmr.msra.gmra.mrb[8].mxu1 %vm525_vm2, %v1063_v38 }
 0x392   : > { %1599 = vmatpush3.bf16.xpose.msra.mxu1 %v1198_v41  ;;  %1600 = vmatprep.mubr.msk.bf16.mxu1 %vm1751_vm1, %v1750_v60 }
 0x399   : > { %1601 = vmatmul.mubr.msk.bf16.vlgmr.msra.gmra.mrb[12].mxu1 %vm525_vm2, %v1191_v42 }
 0x454   : > { %v2098_v43 = vpop.f32.mrb[0].mxu1 }
 0x455   : > { %v1572_v44 = vpop.f32.mrb[1].mxu1 }
 0x456   : > { %v920_v45 = vpop.f32.mrb[2].mxu1 }
 0x457   : > { %v1573_v46 = vpop.f32.mrb[3].mxu1 }
 0x45c   : > { %v978_v47 = vpop.f32.mrb[4].mxu1 }
 0x45d   : > { %v1578_v48 = vpop.f32.mrb[5].mxu1  ;;  %v984_v49 = vsel %vm529_vm4, %v978_v47, -inf }
 0x45e   : > { %985 = vmax.xlane.f32.xlu0 %v984_v49  ;;  %v981_v50 = vpop.f32.mrb[6].mxu1  ;;  %v807_v49 = vld [vmem:[#allocation4] sm:$0xff] }
 0x45f   : > { %v1579_v51 = vpop.f32.mrb[7].mxu1 }
 0x464   : > { %v1106_v7 = vpop.f32.mrb[8].mxu1 }
 0x465   : > { %v1590_v52 = vpop.f32.mrb[9].mxu1  ;;  %v1112_v53 = vsel %vm529_vm4, %v1106_v7, -inf }
 0x466   : > { %1113 = vmax.xlane.f32.xlu1 %v1112_v53  ;;  %v1109_v54 = vpop.f32.mrb[10].mxu1  ;;  %v870_v52 = vmul.f32 %v2133_v23, %v807_v49 }
 0x467   : > { %v1591_v55 = vpop.f32.mrb[11].mxu1 }
 0x46c   : > { %v2102_v56 = vpop.f32.mrb[12].mxu1 }
 0x46d   : > { %v1602_v57 = vpop.f32.mrb[13].mxu1  ;;  %v1240_v58 = vsel %vm529_vm4, %v2102_v56, -inf }
 0x46e   : > { %1241 = vmax.xlane.f32.xlu0 %v1240_v58  ;;  %v1237_v59 = vpop.f32.mrb[14].mxu1 }
 0x46f   : > { %v1603_v61 = vpop.f32.mrb[15].mxu1 }
 0x4eb   : > { %v986_v8 = vpop.xlane.xlu0 %985 }
 0x4ec   : > { %v987_v9 = vmax.f32 %v2067_v29, %v986_v8 }
 0x4ee   : > { %993 = vperm.xlu0 %1687, %v987_v9   ;;  %v1319_v18 = vsel %vm1318_vm9, %v2070_v30, %v987_v9  ;;  %v988_v0 = vsub.f32 %v2067_v29, %v987_v9 }
 0x4f0   : > { %v989_v12 = vmul.f32 1.442695, %v988_v0 }
 0x4f2   : > { %1689 = vset.pattern.permute.xlu0 %v1759_v10 }
 0x4f3   : > { %v1114_v13 = vpop.xlane.xlu1 %1113 }
 0x4f4   : > { %v2113_v14 = vmax.f32 %v2067_v29, %v1114_v13 }
 0x4f6   : > { %1121 = vperm.xlu1 %1688, %v2113_v14   ;;  %v1321_v21 = vsel %vm1320_vm10, %v1319_v18, %v2113_v14  ;;  %v1116_v38 = vsub.f32 %v2067_v29, %v2113_v14 }
 0x4f8   : > { %v1117_v41 = vmul.f32 1.442695, %v1116_v38 }
 0x4fa   : > { %1005 = vrot.lane.b32.xlu1 %v2075_v3, %s1760_s13 }
 0x4fb   : > { %v1242_v16 = vpop.xlane.xlu0 %1241 }
 0x4fc   : > { %v2120_v20 = vmax.f32 %v2067_v29, %v1242_v16 }
 0x4fe   : > { %v1323_v22 = vsel %vm1322_vm11, %v1321_v21, %v2120_v20  ;;  %1249 = vperm.xlu0 %1689, %v2120_v20   ;;  %1133 = vrot.lane.b32.xlu1 %v2075_v3, %s1761_s14  ;;  %v1244_v42 = vsub.f32 %v2067_v29, %v2120_v20 }
 0x4ff   : > { %1324 = vst.msk [vmem:[#allocation3] sm:$0xff] %vm523_vm0, %v1323_v22 }
 0x500   : > { %v1245_v45 = vmul.f32 1.442695, %v1244_v42 }
 0x502   : > { %1261 = vrot.lane.b32.xlu0 %v2075_v3, %s1762_s15 }
 0x503   : > { %1690 = vset.pattern.permute.xlu0 %v1752_v1 }
 0x506   : > { %925 = vperm.xlu0 %1690, %v2133_v23  }
 0x50a   : > { %1691 = vset.pattern.permute.xlu0 %v1757_v62 }
 0x522   : > { %872 = vadd.xlane.f32.xlu1 %v871_v24 }
 0x56d   : > { %v994_v25 = vpop.permute.xlu0 %993 }
 0x56e   : > { %v996_v17 = vsub.f32 %v978_v47, %v994_v25 }
 0x570   : > { %v997_v19 = vmul.f32 1.442695, %v996_v17 }
 0x572   : > { %1703 = vpow2.f32 %v997_v19 }
 0x575   : > { %v1122_v26 = vpop.permute.xlu1 %1121 }
 0x576   : > { %v1124_v27 = vsub.f32 %v1106_v7, %v1122_v26  ;;  %v808_v26 = vld [vmem:[#allocation5] sm:$0xff] }
 0x578   : > { %v1125_v5 = vmul.f32 1.442695, %v1124_v27 }
 0x579   : > { %v1006_v28 = vpop.permute.xlu1 %1005 }
 0x57a   : > { %1705 = vpow2.f32 %v1125_v5  ;;  %1581 = vmatpush3.bf16.msra.mxu0 %v1006_v28 }
 0x57b   : > { %1592 = vmatprep.subr.bf16.mxu0 %v1750_v60 }
 0x57c   : > { %v1704_v4 = vpop.eup %1703 }
 0x57d   : > { %v1250_v30 = vpop.permute.xlu0 %1249  ;;  %v1000_v3 = vsel %vm529_vm4, %v1704_v4, 0.0  ;;  %v1004_v2 = vpack.c.bf16 %v1704_v4, %v1704_v4  ;;  %v1134_v31 = vpop.permute.xlu1 %1133 }
 0x57e   : > { %v1252_v32 = vsub.f32 %v2102_v56, %v1250_v30  ;;  %1001 = vadd.xlane.f32.xlu0 %v1000_v3 }
 0x57f   : > { %1583 = vmatmul.mubr.msk.bf16.vlgmr.msra.gmra.mrb[4].mxu0 %vm529_vm4, %v1004_v2 }
 0x580   : > { %v1253_v33 = vmul.f32 1.442695, %v1252_v32  ;;  %1593 = vmatpush3.bf16.msra.mxu0 %v1134_v31  ;;  %1594 = vmatprep.mubr.msk.bf16.mxu0 %vm1751_vm1, %v1750_v60 }
 0x581   : > { %1604 = vmatprep.subr.bf16.mxu0 %v1750_v60  ;;  %v1262_v36 = vpop.permute.xlu0 %1261 }
 0x582   : > { %1707 = vpow2.f32 %v1253_v33 }
 0x583   : > { %1709 = vpow2.f32 %v989_v12 }
 0x584   : > { %v1706_v6 = vpop.eup %1705  ;;  %1711 = vpow2.f32 %v1117_v41 }
 0x585   : > { %v1128_v34 = vsel %vm529_vm4, %v1706_v6, 0.0  ;;  %v1132_v35 = vpack.c.bf16 %v1706_v6, %v1706_v6  ;;  %1713 = vpow2.f32 %v1245_v45  ;;  %v926_v47 = vpop.permute.xlu0 %925 }
 0x586   : > { %1129 = vadd.xlane.f32.xlu1 %v1128_v34  ;;  %v928_v5 = vmul.f32 %v926_v47, %v808_v26 }
 0x587   : > { %1595 = vmatmul.mubr.msk.bf16.vlgmr.msra.gmra.mrb[8].mxu0 %vm529_vm4, %v1132_v35 }
 0x588   : > { %1605 = vmatpush3.bf16.msra.mxu0 %v1262_v36  ;;  %1606 = vmatprep.mubr.msk.bf16.mxu0 %vm1751_vm1, %v1750_v60  ;;  %v929_v31 = vadd.f32 %v928_v5, %v2098_v43 }
 0x58c   : > { %v1708_v37 = vpop.eup %1707 }
 0x58d   : > { %v1256_v39 = vsel %vm529_vm4, %v1708_v37, 0.0  ;;  %v1260_v40 = vpack.c.bf16 %v1708_v37, %v1708_v37  ;;  %v1710_v44 = vpop.eup %1709 }
 0x58e   : > { %1257 = vadd.xlane.f32.xlu1 %v1256_v39  ;;  %v1712_v60 = vpop.eup %1711  ;;  %v999_v29 = vmul.f32 %v1710_v44, %v807_v49 }
 0x58f   : > { %1607 = vmatmul.mubr.msk.bf16.vlgmr.msra.gmra.mrb[12].mxu0 %vm529_vm4, %v1260_v40  ;;  %v1714_v46 = vpop.eup %1713  ;;  %v1127_v7 = vmul.f32 %v1712_v60, %v807_v49 }
 0x590   : > { %v1255_v56 = vmul.f32 %v1714_v46, %v807_v49 }
 0x594   : > { %1053 = vperm.xlu0 %1691, %v1710_v44  }
 0x598   : > { %1695 = vset.pattern.permute.xlu0 %v1758_v63 }
 0x59f   : > { %1181 = vperm.xlu1 %1688, %v1712_v60  }
 0x5a3   : > { %1692 = vset.pattern.permute.xlu1 %v1759_v10 }
 0x5a4   : > { %1309 = vperm.xlu1 %1692, %v1714_v46  }
 0x5a8   : > { %1693 = vset.pattern.permute.xlu1 %v1752_v1 }
 0x5af   : > { %v873_v48 = vpop.xlane.xlu1 %872 }
 0x5b0   : > { %v874_v55 = vadd.f32 %v873_v48, %v870_v52 }
 0x60b   : > { %v1002_v50 = vpop.xlane.xlu0 %1001 }
 0x60c   : > { %v1003_v53 = vadd.f32 %v1002_v50, %v999_v29 }
 0x60e   : > { %v1325_v58 = vsel %vm1318_vm9, %v874_v55, %v1003_v53 }
 0x613   : > { %v1130_v51 = vpop.xlane.xlu1 %1129  ;;  %v1054_v27 = vpop.permute.xlu0 %1053 }
 0x614   : > { %v1131_v54 = vadd.f32 %v1130_v51, %v1127_v7  ;;  %v1056_v28 = vmul.f32 %v1054_v27, %v808_v26 }
 0x616   : > { %v1326_v61 = vsel %vm1320_vm10, %v1325_v58, %v1131_v54 }
 0x61b   : > { %v1258_v57 = vpop.xlane.xlu1 %1257 }
 0x61c   : > { %v1259_v59 = vadd.f32 %v1258_v57, %v1255_v56 }
 0x61e   : > { %v1327_v1 = vsel %vm1322_vm11, %v1326_v61, %v1259_v59 }
 0x61f   : > { %1328 = vst.msk [vmem:[#allocation4] sm:$0xff] %vm523_vm0, %v1327_v1  ;;  %v1182_v24 = vpop.permute.xlu1 %1181 }
 0x620   : > { %v1184_v30 = vmul.f32 %v1182_v24, %v808_v26 }
 0x623   : > { %v1310_v25 = vpop.permute.xlu1 %1309 }
 0x624   : > { %v1312_v32 = vmul.f32 %v1310_v25, %v808_v26 }
 0x626   : > { %v1337_v63 = vld [vmem:[#allocation4] sm:$0xff] }
 0x627   : > { %1715 = vrcp.f32 %v1337_v63 }
 0x631   : > { %v1716_v8 = vpop.eup %1715 }
 0x632   : > { %1352 = vperm.xlu0 %1695, %v1716_v8   ;;  %1342 = vperm.xlu1 %1693, %v1716_v8  }
 0x636   : > { %1694 = vset.pattern.permute.xlu1 %v1757_v62  ;;  %1697 = vset.pattern.permute.xlu0 %v1759_v10 }
 0x652   : > { %v1045_v9 = vpop.f32.mrb[4].mxu0 }
 0x653   : > { %1058 = vrot.lane.b32.xlu1 %v1045_v9, %s1745_s17  ;;  %v1584_v11 = vpop.f32.mrb[5].mxu0 }
 0x654   : > { %v1048_v13 = vpop.f32.mrb[6].mxu0 }
 0x655   : > { %v1585_v14 = vpop.f32.mrb[7].mxu0 }
 0x65a   : > { %v1173_v15 = vpop.f32.mrb[8].mxu0 }
 0x65b   : > { %1186 = vrot.lane.b32.xlu1 %v1173_v15, %s1746_s18  ;;  %v1596_v16 = vpop.f32.mrb[9].mxu0  ;;  %s398_s18 = scalar_lea.vmem %s2200_s6, %s1530_s25 }
 0x65c   : > { %v1176_v18 = vpop.f32.mrb[10].mxu0 }
 0x65d   : > { %v1597_v20 = vpop.f32.mrb[11].mxu0 }
 0x662   : > { %v1301_v21 = vpop.f32.mrb[12].mxu0 }
 0x663   : > { %1314 = vrot.lane.b32.xlu1 %v1301_v21, %s1747_s19  ;;  %v1608_v22 = vpop.f32.mrb[13].mxu0 }
 0x664   : > { %v1304_v23 = vpop.f32.mrb[14].mxu0 }
 0x665   : > { %v1609_v62 = vpop.f32.mrb[15].mxu0 }
 0x667   : > { %1347 = vperm.xlu1 %1694, %v1716_v8  }
 0x66b   : > { %1696 = vset.pattern.permute.xlu1 %v1759_v10 }
 0x66c   : > { %1357 = vperm.xlu1 %1696, %v1716_v8  }
 0x6b1   : > { %v1343_v17 = vpop.permute.xlu1 %1342  ;;  %v1353_v38 = vpop.permute.xlu0 %1352 }
 0x6c5   : > { %v1059_v19 = vpop.permute.xlu1 %1058 }
 0x6c6   : > { %v1061_v3 = vadd.f32 %v1059_v19, %v1056_v28 }
 0x6c8   : > { %v1329_v10 = vsel %vm525_vm2, %v929_v31, %v1061_v3 }
 0x6cd   : > { %v1187_v4 = vpop.permute.xlu1 %1186 }
 0x6ce   : > { %v1189_v2 = vadd.f32 %v1187_v4, %v1184_v30 }
 0x6d0   : > { %v1330_v6 = vsel %vm529_vm4, %v1329_v10, %v1189_v2 }
 0x6d5   : > { %v1315_v33 = vpop.permute.xlu1 %1314 }
 0x6d6   : > { %v1317_v0 = vadd.f32 %v1315_v33, %v1312_v32 }
 0x6d8   : > { %v1331_v12 = vsel %vm533_vm6, %v1330_v6, %v1317_v0 }
 0x6d9   : > { %1333 = vst.msk [vmem:[#allocation5] sm:$0xff] %vm542_vm12, %v1331_v12 }
 0x6e0   : > { %v1339_v34 = vld [vmem:[#allocation5] sm:$0xff] }
 0x6e1   : > { %v1345_v37 = vmul.f32 %v1343_v17, %v1339_v34  ;;  %v1355_v43 = vmul.f32 %v1353_v38, %v1339_v34 }
 0x6e6   : > { %v1348_v35 = vpop.permute.xlu1 %1347 }
 0x6e7   : > { %v1350_v36 = vmul.f32 %v1348_v35, %v1339_v34 }
 0x6e9   : > { %v1361_v39 = vsel %vm525_vm2, %v1345_v37, %v1350_v36 }
 0x6ea   : > { %v1362_v42 = vsel %vm529_vm4, %v1361_v39, %v1355_v43 }
 0x6eb   : > { %v1358_v40 = vpop.permute.xlu1 %1357 }
 0x6ec   : > { %v1360_v41 = vmul.f32 %v1358_v40, %v1339_v34 }
 0x6ee   : > { %v1363_v44 = vsel %vm533_vm6, %v1362_v42, %v1360_v41 }
 0x6ef   : > { %1364 = vst.msk [vmem:[%s398_s18] sm:$0xff] %vm542_vm12, %v1363_v44 }
 0x6f0 PF: > { %s16_s23 = sadd.s32 1, %s1739_s23   ;;  %s2201_s21 = smov %s1735_s22 }
 0x6f1   : > { %p13_p5 = scmp.ge.s32.totalorder %s16_s23, 4   ;;  %s2202_s22 = smov %s2204_s24 }
 0x6f3   :  { %15 = sbr.rel (!%p13_p5) target bundleno = 2 (0x2), region = 97 }

</bundles_post_ra>
